<compile_context>
chip_gen: v7x
topology: tpu7x:2x2x1
jax: 0.10.0
libtpu: 0.0.40
codegen_flags: <defaults>
</compile_context>

<pallas_src>
import functools

import jax
import jax.numpy as jnp
from jax.experimental import pallas as pl
from jax.experimental.pallas import tpu as pltpu


def _log_sigmoid(x):
    # Numerically stable log(sigmoid(x)) = min(x, 0) - log(1 + exp(-|x|)).
    return jnp.minimum(x, 0.0) - jnp.log(1.0 + jnp.exp(-jnp.abs(x)))


def _skipgram_kernel(center_ref, rows_ref,          # SMEM scalar-prefetch ids
                     wi_hbm, wo_hbm,                # raw HBM refs (pl.ANY)
                     out_ref,                       # (1,1) SMEM scalar output
                     wi_buf, rows_buf, sems,        # scratch
                     *, num_ctx, num_neg, batch):
    b = pl.program_id(0)
    nb = pl.num_programs(0)
    R = num_ctx + num_neg                           # rows gathered per batch elem

    def fetch(bi, slot):
        # center embedding row from wi table
        pltpu.make_async_copy(
            wi_hbm.at[pl.ds(center_ref[bi], 1), :],
            wi_buf.at[slot],
            sems.at[slot, 0]).start()
        # context + negative rows from wo table (one small row DMA each)
        for r in range(R):
            pltpu.make_async_copy(
                wo_hbm.at[pl.ds(rows_ref[bi, r], 1), :],
                rows_buf.at[slot, pl.ds(r, 1), :],
                sems.at[slot, 1 + r]).start()

    def wait(bi, slot):
        pltpu.make_async_copy(
            wi_hbm.at[pl.ds(center_ref[bi], 1), :],
            wi_buf.at[slot],
            sems.at[slot, 0]).wait()
        for r in range(R):
            pltpu.make_async_copy(
                wo_hbm.at[pl.ds(rows_ref[bi, r], 1), :],
                rows_buf.at[slot, pl.ds(r, 1), :],
                sems.at[slot, 1 + r]).wait()

    slot = b % 2

    @pl.when(b == 0)
    def _():
        out_ref[0, 0] = jnp.float32(0.0)
        fetch(0, 0)                                  # prime the pipeline

    # Prefetch next batch element's rows while we compute on the current one.
    @pl.when(b + 1 < nb)
    def _():
        fetch(b + 1, 1 - slot)

    wait(b, slot)

    wi = wi_buf[slot]                                # [1, D]
    rows = rows_buf[slot]                            # [R, D] (contexts ++ negs)

    # Row-wise dot products: VPU multiply + XLU lane reduce (no MXU).
    scores = jnp.sum(rows * wi, axis=-1, keepdims=True)          # [R, 1]

    idx = jax.lax.broadcasted_iota(jnp.int32, (R, 1), 0)
    is_pos = idx < num_ctx
    # Positives: log_sigmoid(score); negatives: log_sigmoid(-score).
    signed = jnp.where(is_pos, scores, -scores)
    # Collapsed two-stage mean -> single weighted sum.
    coef = jnp.where(is_pos,
                     1.0 / (batch * num_ctx),
                     1.0 / (batch * num_neg)).astype(jnp.float32)
    partial = jnp.sum(_log_sigmoid(signed) * coef)

    out_ref[0, 0] = out_ref[0, 0] + partial

    @pl.when(b == nb - 1)
    def _():
        out_ref[0, 0] = -out_ref[0, 0]


def skipgram_forward(wi_weight, wo_weight, center, contexts, neg_samples):
    """Mirrors SkipGram.forward.

    wi_weight, wo_weight : [vocab, D] float32 (stay in HBM)
    center               : [B]        int32
    contexts             : [B, C]     int32
    neg_samples          : [B, N]     int32 (torch does .long() cast)
    Returns scalar float32 loss.
    """
    center = center.astype(jnp.int32)
    contexts = contexts.astype(jnp.int32)
    neg_samples = neg_samples.astype(jnp.int32)

    B, C = contexts.shape
    _, N = neg_samples.shape
    _, D = wi_weight.shape
    R = C + N

    # Packed row ids per batch element: [contexts | negatives] -> [B, C+N].
    rows = jnp.concatenate([contexts, neg_samples], axis=1)

    kernel = functools.partial(
        _skipgram_kernel, num_ctx=C, num_neg=N, batch=B)

    grid_spec = pltpu.PrefetchScalarGridSpec(
        num_scalar_prefetch=2,               # center ids, packed row ids
        grid=(B,),
        in_specs=[
            pl.BlockSpec(memory_space=pl.ANY),    # wi table stays in HBM
            pl.BlockSpec(memory_space=pl.ANY),    # wo table stays in HBM
        ],
        out_specs=pl.BlockSpec(memory_space=pltpu.SMEM),
        scratch_shapes=[
            pltpu.VMEM((2, 1, D), jnp.float32),   # double-buffered center row
            pltpu.VMEM((2, R, D), jnp.float32),   # double-buffered ctx+neg rows
            pltpu.SemaphoreType.DMA((2, R + 1)),  # one sem per row DMA per slot
        ],
    )

    out = pl.pallas_call(
        kernel,
        out_shape=jax.ShapeDtypeStruct((1, 1), jnp.float32),
        grid_spec=grid_spec,
        compiler_params=pltpu.CompilerParams(
            # scalar accumulator lives across the batch axis -> "arbitrary"
            dimension_semantics=("arbitrary",)),
    )(center, rows, wi_weight, wo_weight)
    return out[0, 0]


def reference_forward(wi_weight, wo_weight, center, contexts, neg_samples):
    """Pure-JAX reference matching the PyTorch module exactly."""
    neg_samples = neg_samples.astype(jnp.int32)
    wi = jnp.take(wi_weight, center, axis=0)[:, :, None]          # [B, D, 1]
    wo = jnp.take(wo_weight, contexts, axis=0)                    # [B, C, D]
    nv = -jnp.take(wo_weight, neg_samples, axis=0)                # [B, N, D]
    pos = jnp.squeeze(jnp.matmul(wo, wi), axis=-1)                # [B, C]
    neg = jnp.squeeze(jnp.matmul(nv, wi), axis=-1)                # [B, N]
    oloss = jnp.mean(jnp.log(jax.nn.sigmoid(pos)), axis=1)
    nloss = jnp.mean(jnp.log(jax.nn.sigmoid(neg)), axis=1)
    return -jnp.mean(oloss + nloss)


if __name__ == "__main__":
    vocab_size = 512
    embed_dim = 128     # lane-aligned embed dim
    B, C, N = 8, 4, 6   # batch, context window size, negative samples
    padding_idx = 0     # note: torch init overwrites the padding row too

    key = jax.random.PRNGKey(0)
    k_wi, k_wo, k_c, k_ctx, k_neg = jax.random.split(key, 5)

    # Deterministic init matching uniform_(-r, r) with |r| = 0.5 / embed_dim.
    r = 0.5 / embed_dim
    wi_weight = jax.random.uniform(
        k_wi, (vocab_size, embed_dim), jnp.float32, minval=-r, maxval=r)
    wo_weight = jax.random.uniform(
        k_wo, (vocab_size, embed_dim), jnp.float32, minval=-r, maxval=r)

    center = jax.random.randint(k_c, (B,), 1, vocab_size, dtype=jnp.int32)
    contexts = jax.random.randint(k_ctx, (B, C), 1, vocab_size, dtype=jnp.int32)
    neg_samples = jax.random.randint(k_neg, (B, N), 1, vocab_size, dtype=jnp.int32)

    loss = jax.block_until_ready(
        skipgram_forward(wi_weight, wo_weight, center, contexts, neg_samples))
    ref = jax.block_until_ready(
        reference_forward(wi_weight, wo_weight, center, contexts, neg_samples))

    assert jnp.allclose(loss, ref, rtol=1e-5, atol=1e-6), (loss, ref)
    print("KERNEL_OK")
</pallas_src>

<mosaic_0001>
module attributes {stable_mosaic.version = 11 : i64} {
  func.func @_skipgram_kernel(%arg0: i32, %arg1: memref<8xi32, #tpu.memory_space<smem>>, %arg2: memref<8x10xi32, #tpu.memory_space<smem>>, %arg3: memref<512x128xf32, #tpu.memory_space<any>>, %arg4: memref<512x128xf32, #tpu.memory_space<any>>, %arg5: memref<1x1xf32, #tpu.memory_space<smem>>, %arg6: memref<2x1x128xf32, #tpu.memory_space<vmem>>, %arg7: memref<2x10x128xf32, #tpu.memory_space<vmem>>, %arg8: memref<2x11x!tpu.dma_semaphore, #tpu.memory_space<semaphore_mem>>) attributes {dimension_semantics = [#tpu.dimension_semantics<arbitrary>], iteration_bounds = array<i64: 8>, scalar_prefetch = 2 : i64, scratch_operands = 3 : i64, tpu.core_type = #tpu.core_type<tc>, window_params = [{}, {}, {transform_indices = @transform_2, window_bounds = array<i64: 1, 1>}]} {
    %c2_i32 = arith.constant 2 : i32
    %c0_i32 = arith.constant 0 : i32
    %0 = arith.cmpi eq, %c2_i32, %c0_i32 : i32
    %c1_i32 = arith.constant 1 : i32
    %1 = arith.select %0, %c1_i32, %c2_i32 : i32
    %2 = arith.remsi %arg0, %1 : i32
    %c0_i32_0 = arith.constant 0 : i32
    %3 = arith.cmpi ne, %2, %c0_i32_0 : i32
    %c0_i32_1 = arith.constant 0 : i32
    %4 = arith.cmpi slt, %2, %c0_i32_1 : i32
    %c0_i32_2 = arith.constant 0 : i32
    %5 = arith.cmpi slt, %1, %c0_i32_2 : i32
    %6 = arith.xori %4, %5 : i1
    %7 = arith.andi %6, %3 : i1
    %8 = arith.addi %2, %1 : i32
    %9 = arith.select %7, %8, %2 : i32
    %c0_i32_3 = arith.constant 0 : i32
    %10 = arith.cmpi eq, %arg0, %c0_i32_3 : i32
    %11 = arith.extui %10 : i1 to i32
    %c0_i32_4 = arith.constant 0 : i32
    %12 = arith.cmpi ne, %11, %c0_i32_4 : i32
    scf.if %12 {
      %cst_62 = arith.constant 0.000000e+00 : f32
      %c0_63 = arith.constant 0 : index
      %c0_64 = arith.constant 0 : index
      %134 = memref.load %arg5[%c0_63, %c0_64] : memref<1x1xf32, #tpu.memory_space<smem>>
      memref.store %cst_62, %arg5[%c0_63, %c0_64] : memref<1x1xf32, #tpu.memory_space<smem>>
      %c0_65 = arith.constant 0 : index
      %135 = memref.load %arg1[%c0_65] : memref<8xi32, #tpu.memory_space<smem>>
      %c0_i32_66 = arith.constant 0 : i32
      %c0_i32_67 = arith.constant 0 : i32
      %c0_i32_68 = arith.constant 0 : i32
      %c0_i32_69 = arith.constant 0 : i32
      %136 = tpu.memref_slice %arg3[%135, %c0_i32_69] : memref<512x128xf32, #tpu.memory_space<any>> -> memref<1x128xf32, #tpu.memory_space<any>>
      %c0_i32_70 = arith.constant 0 : i32
      %c0_i32_71 = arith.constant 0 : i32
      %137 = tpu.memref_slice %arg6[%c0_i32_66, %c0_i32_70, %c0_i32_71] : memref<2x1x128xf32, #tpu.memory_space<vmem>> -> memref<1x1x128xf32, #tpu.memory_space<vmem>>
      %138 = tpu.memref_squeeze %137 : memref<1x1x128xf32, #tpu.memory_space<vmem>> -> memref<1x128xf32, #tpu.memory_space<vmem>>
      %139 = tpu.memref_slice %arg8[%c0_i32_67, %c0_i32_68] : memref<2x11x!tpu.dma_semaphore, #tpu.memory_space<semaphore_mem>> -> memref<1x1x!tpu.dma_semaphore, #tpu.memory_space<semaphore_mem>>
      %140 = tpu.memref_squeeze %139 : memref<1x1x!tpu.dma_semaphore, #tpu.memory_space<semaphore_mem>> -> memref<!tpu.dma_semaphore, #tpu.memory_space<semaphore_mem>>
      tpu.enqueue_dma source(%136 : memref<1x128xf32, #tpu.memory_space<any>>) target(%138 : memref<1x128xf32, #tpu.memory_space<vmem>>) target_semaphore(%140 : memref<!tpu.dma_semaphore, #tpu.memory_space<semaphore_mem>>)
      %c0_72 = arith.constant 0 : index
      %c0_73 = arith.constant 0 : index
      %141 = memref.load %arg2[%c0_72, %c0_73] : memref<8x10xi32, #tpu.memory_space<smem>>
      %c0_i32_74 = arith.constant 0 : i32
      %c0_i32_75 = arith.constant 0 : i32
      %c1_i32_76 = arith.constant 1 : i32
      %c0_i32_77 = arith.constant 0 : i32
      %142 = tpu.memref_slice %arg4[%141, %c0_i32_77] : memref<512x128xf32, #tpu.memory_space<any>> -> memref<1x128xf32, #tpu.memory_space<any>>
      %c0_i32_78 = arith.constant 0 : i32
      %c0_i32_79 = arith.constant 0 : i32
      %143 = tpu.memref_slice %arg7[%c0_i32_74, %c0_i32_78, %c0_i32_79] : memref<2x10x128xf32, #tpu.memory_space<vmem>> -> memref<1x1x128xf32, #tpu.memory_space<vmem>>
      %144 = tpu.memref_squeeze %143 : memref<1x1x128xf32, #tpu.memory_space<vmem>> -> memref<1x128xf32, #tpu.memory_space<vmem>>
      %145 = tpu.memref_slice %arg8[%c0_i32_75, %c1_i32_76] : memref<2x11x!tpu.dma_semaphore, #tpu.memory_space<semaphore_mem>> -> memref<1x1x!tpu.dma_semaphore, #tpu.memory_space<semaphore_mem>>
      %146 = tpu.memref_squeeze %145 : memref<1x1x!tpu.dma_semaphore, #tpu.memory_space<semaphore_mem>> -> memref<!tpu.dma_semaphore, #tpu.memory_space<semaphore_mem>>
      tpu.enqueue_dma source(%142 : memref<1x128xf32, #tpu.memory_space<any>>) target(%144 : memref<1x128xf32, #tpu.memory_space<vmem>>) target_semaphore(%146 : memref<!tpu.dma_semaphore, #tpu.memory_space<semaphore_mem>>)
      %c0_80 = arith.constant 0 : index
      %c1_81 = arith.constant 1 : index
      %147 = memref.load %arg2[%c0_80, %c1_81] : memref<8x10xi32, #tpu.memory_space<smem>>
      %c0_i32_82 = arith.constant 0 : i32
      %c0_i32_83 = arith.constant 0 : i32
      %c2_i32_84 = arith.constant 2 : i32
      %c0_i32_85 = arith.constant 0 : i32
      %148 = tpu.memref_slice %arg4[%147, %c0_i32_85] : memref<512x128xf32, #tpu.memory_space<any>> -> memref<1x128xf32, #tpu.memory_space<any>>
      %c1_i32_86 = arith.constant 1 : i32
      %c0_i32_87 = arith.constant 0 : i32
      %149 = tpu.memref_slice %arg7[%c0_i32_82, %c1_i32_86, %c0_i32_87] : memref<2x10x128xf32, #tpu.memory_space<vmem>> -> memref<1x1x128xf32, #tpu.memory_space<vmem>>
      %150 = tpu.memref_squeeze %149 : memref<1x1x128xf32, #tpu.memory_space<vmem>> -> memref<1x128xf32, #tpu.memory_space<vmem>>
      %151 = tpu.memref_slice %arg8[%c0_i32_83, %c2_i32_84] : memref<2x11x!tpu.dma_semaphore, #tpu.memory_space<semaphore_mem>> -> memref<1x1x!tpu.dma_semaphore, #tpu.memory_space<semaphore_mem>>
      %152 = tpu.memref_squeeze %151 : memref<1x1x!tpu.dma_semaphore, #tpu.memory_space<semaphore_mem>> -> memref<!tpu.dma_semaphore, #tpu.memory_space<semaphore_mem>>
      tpu.enqueue_dma source(%148 : memref<1x128xf32, #tpu.memory_space<any>>) target(%150 : memref<1x128xf32, #tpu.memory_space<vmem>>) target_semaphore(%152 : memref<!tpu.dma_semaphore, #tpu.memory_space<semaphore_mem>>)
      %c0_88 = arith.constant 0 : index
      %c2_89 = arith.constant 2 : index
      %153 = memref.load %arg2[%c0_88, %c2_89] : memref<8x10xi32, #tpu.memory_space<smem>>
      %c0_i32_90 = arith.constant 0 : i32
      %c0_i32_91 = arith.constant 0 : i32
      %c3_i32_92 = arith.constant 3 : i32
      %c0_i32_93 = arith.constant 0 : i32
      %154 = tpu.memref_slice %arg4[%153, %c0_i32_93] : memref<512x128xf32, #tpu.memory_space<any>> -> memref<1x128xf32, #tpu.memory_space<any>>
      %c2_i32_94 = arith.constant 2 : i32
      %c0_i32_95 = arith.constant 0 : i32
      %155 = tpu.memref_slice %arg7[%c0_i32_90, %c2_i32_94, %c0_i32_95] : memref<2x10x128xf32, #tpu.memory_space<vmem>> -> memref<1x1x128xf32, #tpu.memory_space<vmem>>
      %156 = tpu.memref_squeeze %155 : memref<1x1x128xf32, #tpu.memory_space<vmem>> -> memref<1x128xf32, #tpu.memory_space<vmem>>
      %157 = tpu.memref_slice %arg8[%c0_i32_91, %c3_i32_92] : memref<2x11x!tpu.dma_semaphore, #tpu.memory_space<semaphore_mem>> -> memref<1x1x!tpu.dma_semaphore, #tpu.memory_space<semaphore_mem>>
      %158 = tpu.memref_squeeze %157 : memref<1x1x!tpu.dma_semaphore, #tpu.memory_space<semaphore_mem>> -> memref<!tpu.dma_semaphore, #tpu.memory_space<semaphore_mem>>
      tpu.enqueue_dma source(%154 : memref<1x128xf32, #tpu.memory_space<any>>) target(%156 : memref<1x128xf32, #tpu.memory_space<vmem>>) target_semaphore(%158 : memref<!tpu.dma_semaphore, #tpu.memory_space<semaphore_mem>>)
      %c0_96 = arith.constant 0 : index
      %c3_97 = arith.constant 3 : index
      %159 = memref.load %arg2[%c0_96, %c3_97] : memref<8x10xi32, #tpu.memory_space<smem>>
      %c0_i32_98 = arith.constant 0 : i32
      %c0_i32_99 = arith.constant 0 : i32
      %c4_i32_100 = arith.constant 4 : i32
      %c0_i32_101 = arith.constant 0 : i32
      %160 = tpu.memref_slice %arg4[%159, %c0_i32_101] : memref<512x128xf32, #tpu.memory_space<any>> -> memref<1x128xf32, #tpu.memory_space<any>>
      %c3_i32_102 = arith.constant 3 : i32
      %c0_i32_103 = arith.constant 0 : i32
      %161 = tpu.memref_slice %arg7[%c0_i32_98, %c3_i32_102, %c0_i32_103] : memref<2x10x128xf32, #tpu.memory_space<vmem>> -> memref<1x1x128xf32, #tpu.memory_space<vmem>>
      %162 = tpu.memref_squeeze %161 : memref<1x1x128xf32, #tpu.memory_space<vmem>> -> memref<1x128xf32, #tpu.memory_space<vmem>>
      %163 = tpu.memref_slice %arg8[%c0_i32_99, %c4_i32_100] : memref<2x11x!tpu.dma_semaphore, #tpu.memory_space<semaphore_mem>> -> memref<1x1x!tpu.dma_semaphore, #tpu.memory_space<semaphore_mem>>
      %164 = tpu.memref_squeeze %163 : memref<1x1x!tpu.dma_semaphore, #tpu.memory_space<semaphore_mem>> -> memref<!tpu.dma_semaphore, #tpu.memory_space<semaphore_mem>>
      tpu.enqueue_dma source(%160 : memref<1x128xf32, #tpu.memory_space<any>>) target(%162 : memref<1x128xf32, #tpu.memory_space<vmem>>) target_semaphore(%164 : memref<!tpu.dma_semaphore, #tpu.memory_space<semaphore_mem>>)
      %c0_104 = arith.constant 0 : index
      %c4_105 = arith.constant 4 : index
      %165 = memref.load %arg2[%c0_104, %c4_105] : memref<8x10xi32, #tpu.memory_space<smem>>
      %c0_i32_106 = arith.constant 0 : i32
      %c0_i32_107 = arith.constant 0 : i32
      %c5_i32_108 = arith.constant 5 : i32
      %c0_i32_109 = arith.constant 0 : i32
      %166 = tpu.memref_slice %arg4[%165, %c0_i32_109] : memref<512x128xf32, #tpu.memory_space<any>> -> memref<1x128xf32, #tpu.memory_space<any>>
      %c4_i32_110 = arith.constant 4 : i32
      %c0_i32_111 = arith.constant 0 : i32
      %167 = tpu.memref_slice %arg7[%c0_i32_106, %c4_i32_110, %c0_i32_111] : memref<2x10x128xf32, #tpu.memory_space<vmem>> -> memref<1x1x128xf32, #tpu.memory_space<vmem>>
      %168 = tpu.memref_squeeze %167 : memref<1x1x128xf32, #tpu.memory_space<vmem>> -> memref<1x128xf32, #tpu.memory_space<vmem>>
      %169 = tpu.memref_slice %arg8[%c0_i32_107, %c5_i32_108] : memref<2x11x!tpu.dma_semaphore, #tpu.memory_space<semaphore_mem>> -> memref<1x1x!tpu.dma_semaphore, #tpu.memory_space<semaphore_mem>>
      %170 = tpu.memref_squeeze %169 : memref<1x1x!tpu.dma_semaphore, #tpu.memory_space<semaphore_mem>> -> memref<!tpu.dma_semaphore, #tpu.memory_space<semaphore_mem>>
      tpu.enqueue_dma source(%166 : memref<1x128xf32, #tpu.memory_space<any>>) target(%168 : memref<1x128xf32, #tpu.memory_space<vmem>>) target_semaphore(%170 : memref<!tpu.dma_semaphore, #tpu.memory_space<semaphore_mem>>)
      %c0_112 = arith.constant 0 : index
      %c5_113 = arith.constant 5 : index
      %171 = memref.load %arg2[%c0_112, %c5_113] : memref<8x10xi32, #tpu.memory_space<smem>>
      %c0_i32_114 = arith.constant 0 : i32
      %c0_i32_115 = arith.constant 0 : i32
      %c6_i32_116 = arith.constant 6 : i32
      %c0_i32_117 = arith.constant 0 : i32
      %172 = tpu.memref_slice %arg4[%171, %c0_i32_117] : memref<512x128xf32, #tpu.memory_space<any>> -> memref<1x128xf32, #tpu.memory_space<any>>
      %c5_i32_118 = arith.constant 5 : i32
      %c0_i32_119 = arith.constant 0 : i32
      %173 = tpu.memref_slice %arg7[%c0_i32_114, %c5_i32_118, %c0_i32_119] : memref<2x10x128xf32, #tpu.memory_space<vmem>> -> memref<1x1x128xf32, #tpu.memory_space<vmem>>
      %174 = tpu.memref_squeeze %173 : memref<1x1x128xf32, #tpu.memory_space<vmem>> -> memref<1x128xf32, #tpu.memory_space<vmem>>
      %175 = tpu.memref_slice %arg8[%c0_i32_115, %c6_i32_116] : memref<2x11x!tpu.dma_semaphore, #tpu.memory_space<semaphore_mem>> -> memref<1x1x!tpu.dma_semaphore, #tpu.memory_space<semaphore_mem>>
      %176 = tpu.memref_squeeze %175 : memref<1x1x!tpu.dma_semaphore, #tpu.memory_space<semaphore_mem>> -> memref<!tpu.dma_semaphore, #tpu.memory_space<semaphore_mem>>
      tpu.enqueue_dma source(%172 : memref<1x128xf32, #tpu.memory_space<any>>) target(%174 : memref<1x128xf32, #tpu.memory_space<vmem>>) target_semaphore(%176 : memref<!tpu.dma_semaphore, #tpu.memory_space<semaphore_mem>>)
      %c0_120 = arith.constant 0 : index
      %c6_121 = arith.constant 6 : index
      %177 = memref.load %arg2[%c0_120, %c6_121] : memref<8x10xi32, #tpu.memory_space<smem>>
      %c0_i32_122 = arith.constant 0 : i32
      %c0_i32_123 = arith.constant 0 : i32
      %c7_i32_124 = arith.constant 7 : i32
      %c0_i32_125 = arith.constant 0 : i32
      %178 = tpu.memref_slice %arg4[%177, %c0_i32_125] : memref<512x128xf32, #tpu.memory_space<any>> -> memref<1x128xf32, #tpu.memory_space<any>>
      %c6_i32_126 = arith.constant 6 : i32
      %c0_i32_127 = arith.constant 0 : i32
      %179 = tpu.memref_slice %arg7[%c0_i32_122, %c6_i32_126, %c0_i32_127] : memref<2x10x128xf32, #tpu.memory_space<vmem>> -> memref<1x1x128xf32, #tpu.memory_space<vmem>>
      %180 = tpu.memref_squeeze %179 : memref<1x1x128xf32, #tpu.memory_space<vmem>> -> memref<1x128xf32, #tpu.memory_space<vmem>>
      %181 = tpu.memref_slice %arg8[%c0_i32_123, %c7_i32_124] : memref<2x11x!tpu.dma_semaphore, #tpu.memory_space<semaphore_mem>> -> memref<1x1x!tpu.dma_semaphore, #tpu.memory_space<semaphore_mem>>
      %182 = tpu.memref_squeeze %181 : memref<1x1x!tpu.dma_semaphore, #tpu.memory_space<semaphore_mem>> -> memref<!tpu.dma_semaphore, #tpu.memory_space<semaphore_mem>>
      tpu.enqueue_dma source(%178 : memref<1x128xf32, #tpu.memory_space<any>>) target(%180 : memref<1x128xf32, #tpu.memory_space<vmem>>) target_semaphore(%182 : memref<!tpu.dma_semaphore, #tpu.memory_space<semaphore_mem>>)
      %c0_128 = arith.constant 0 : index
      %c7_129 = arith.constant 7 : index
      %183 = memref.load %arg2[%c0_128, %c7_129] : memref<8x10xi32, #tpu.memory_space<smem>>
      %c0_i32_130 = arith.constant 0 : i32
      %c0_i32_131 = arith.constant 0 : i32
      %c8_i32_132 = arith.constant 8 : i32
      %c0_i32_133 = arith.constant 0 : i32
      %184 = tpu.memref_slice %arg4[%183, %c0_i32_133] : memref<512x128xf32, #tpu.memory_space<any>> -> memref<1x128xf32, #tpu.memory_space<any>>
      %c7_i32_134 = arith.constant 7 : i32
      %c0_i32_135 = arith.constant 0 : i32
      %185 = tpu.memref_slice %arg7[%c0_i32_130, %c7_i32_134, %c0_i32_135] : memref<2x10x128xf32, #tpu.memory_space<vmem>> -> memref<1x1x128xf32, #tpu.memory_space<vmem>>
      %186 = tpu.memref_squeeze %185 : memref<1x1x128xf32, #tpu.memory_space<vmem>> -> memref<1x128xf32, #tpu.memory_space<vmem>>
      %187 = tpu.memref_slice %arg8[%c0_i32_131, %c8_i32_132] : memref<2x11x!tpu.dma_semaphore, #tpu.memory_space<semaphore_mem>> -> memref<1x1x!tpu.dma_semaphore, #tpu.memory_space<semaphore_mem>>
      %188 = tpu.memref_squeeze %187 : memref<1x1x!tpu.dma_semaphore, #tpu.memory_space<semaphore_mem>> -> memref<!tpu.dma_semaphore, #tpu.memory_space<semaphore_mem>>
      tpu.enqueue_dma source(%184 : memref<1x128xf32, #tpu.memory_space<any>>) target(%186 : memref<1x128xf32, #tpu.memory_space<vmem>>) target_semaphore(%188 : memref<!tpu.dma_semaphore, #tpu.memory_space<semaphore_mem>>)
      %c0_136 = arith.constant 0 : index
      %c8_137 = arith.constant 8 : index
      %189 = memref.load %arg2[%c0_136, %c8_137] : memref<8x10xi32, #tpu.memory_space<smem>>
      %c0_i32_138 = arith.constant 0 : i32
      %c0_i32_139 = arith.constant 0 : i32
      %c9_i32_140 = arith.constant 9 : i32
      %c0_i32_141 = arith.constant 0 : i32
      %190 = tpu.memref_slice %arg4[%189, %c0_i32_141] : memref<512x128xf32, #tpu.memory_space<any>> -> memref<1x128xf32, #tpu.memory_space<any>>
      %c8_i32_142 = arith.constant 8 : i32
      %c0_i32_143 = arith.constant 0 : i32
      %191 = tpu.memref_slice %arg7[%c0_i32_138, %c8_i32_142, %c0_i32_143] : memref<2x10x128xf32, #tpu.memory_space<vmem>> -> memref<1x1x128xf32, #tpu.memory_space<vmem>>
      %192 = tpu.memref_squeeze %191 : memref<1x1x128xf32, #tpu.memory_space<vmem>> -> memref<1x128xf32, #tpu.memory_space<vmem>>
      %193 = tpu.memref_slice %arg8[%c0_i32_139, %c9_i32_140] : memref<2x11x!tpu.dma_semaphore, #tpu.memory_space<semaphore_mem>> -> memref<1x1x!tpu.dma_semaphore, #tpu.memory_space<semaphore_mem>>
      %194 = tpu.memref_squeeze %193 : memref<1x1x!tpu.dma_semaphore, #tpu.memory_space<semaphore_mem>> -> memref<!tpu.dma_semaphore, #tpu.memory_space<semaphore_mem>>
      tpu.enqueue_dma source(%190 : memref<1x128xf32, #tpu.memory_space<any>>) target(%192 : memref<1x128xf32, #tpu.memory_space<vmem>>) target_semaphore(%194 : memref<!tpu.dma_semaphore, #tpu.memory_space<semaphore_mem>>)
      %c0_144 = arith.constant 0 : index
      %c9_145 = arith.constant 9 : index
      %195 = memref.load %arg2[%c0_144, %c9_145] : memref<8x10xi32, #tpu.memory_space<smem>>
      %c0_i32_146 = arith.constant 0 : i32
      %c0_i32_147 = arith.constant 0 : i32
      %c10_i32_148 = arith.constant 10 : i32
      %c0_i32_149 = arith.constant 0 : i32
      %196 = tpu.memref_slice %arg4[%195, %c0_i32_149] : memref<512x128xf32, #tpu.memory_space<any>> -> memref<1x128xf32, #tpu.memory_space<any>>
      %c9_i32_150 = arith.constant 9 : i32
      %c0_i32_151 = arith.constant 0 : i32
      %197 = tpu.memref_slice %arg7[%c0_i32_146, %c9_i32_150, %c0_i32_151] : memref<2x10x128xf32, #tpu.memory_space<vmem>> -> memref<1x1x128xf32, #tpu.memory_space<vmem>>
      %198 = tpu.memref_squeeze %197 : memref<1x1x128xf32, #tpu.memory_space<vmem>> -> memref<1x128xf32, #tpu.memory_space<vmem>>
      %199 = tpu.memref_slice %arg8[%c0_i32_147, %c10_i32_148] : memref<2x11x!tpu.dma_semaphore, #tpu.memory_space<semaphore_mem>> -> memref<1x1x!tpu.dma_semaphore, #tpu.memory_space<semaphore_mem>>
      %200 = tpu.memref_squeeze %199 : memref<1x1x!tpu.dma_semaphore, #tpu.memory_space<semaphore_mem>> -> memref<!tpu.dma_semaphore, #tpu.memory_space<semaphore_mem>>
      tpu.enqueue_dma source(%196 : memref<1x128xf32, #tpu.memory_space<any>>) target(%198 : memref<1x128xf32, #tpu.memory_space<vmem>>) target_semaphore(%200 : memref<!tpu.dma_semaphore, #tpu.memory_space<semaphore_mem>>)
    } else {
    }
    %c1_i32_5 = arith.constant 1 : i32
    %13 = arith.addi %arg0, %c1_i32_5 : i32
    %c8_i32 = arith.constant 8 : i32
    %14 = arith.cmpi slt, %13, %c8_i32 : i32
    %15 = arith.extui %14 : i1 to i32
    %c0_i32_6 = arith.constant 0 : i32
    %16 = arith.cmpi ne, %15, %c0_i32_6 : i32
    scf.if %16 {
      %c1_i32_62 = arith.constant 1 : i32
      %134 = arith.addi %arg0, %c1_i32_62 : i32
      %c1_i32_63 = arith.constant 1 : i32
      %135 = arith.subi %c1_i32_63, %9 : i32
      %136 = arith.index_cast %134 : i32 to index
      %137 = memref.load %arg1[%136] : memref<8xi32, #tpu.memory_space<smem>>
      %c0_i32_64 = arith.constant 0 : i32
      %c0_i32_65 = arith.constant 0 : i32
      %138 = tpu.memref_slice %arg3[%137, %c0_i32_65] : memref<512x128xf32, #tpu.memory_space<any>> -> memref<1x128xf32, #tpu.memory_space<any>>
      %c0_i32_66 = arith.constant 0 : i32
      %c0_i32_67 = arith.constant 0 : i32
      %139 = tpu.memref_slice %arg6[%135, %c0_i32_66, %c0_i32_67] : memref<2x1x128xf32, #tpu.memory_space<vmem>> -> memref<1x1x128xf32, #tpu.memory_space<vmem>>
      %140 = tpu.memref_squeeze %139 : memref<1x1x128xf32, #tpu.memory_space<vmem>> -> memref<1x128xf32, #tpu.memory_space<vmem>>
      %141 = tpu.memref_slice %arg8[%135, %c0_i32_64] : memref<2x11x!tpu.dma_semaphore, #tpu.memory_space<semaphore_mem>> -> memref<1x1x!tpu.dma_semaphore, #tpu.memory_space<semaphore_mem>>
      %142 = tpu.memref_squeeze %141 : memref<1x1x!tpu.dma_semaphore, #tpu.memory_space<semaphore_mem>> -> memref<!tpu.dma_semaphore, #tpu.memory_space<semaphore_mem>>
      tpu.enqueue_dma source(%138 : memref<1x128xf32, #tpu.memory_space<any>>) target(%140 : memref<1x128xf32, #tpu.memory_space<vmem>>) target_semaphore(%142 : memref<!tpu.dma_semaphore, #tpu.memory_space<semaphore_mem>>)
      %143 = arith.index_cast %134 : i32 to index
      %c0_68 = arith.constant 0 : index
      %144 = memref.load %arg2[%143, %c0_68] : memref<8x10xi32, #tpu.memory_space<smem>>
      %c1_i32_69 = arith.constant 1 : i32
      %c0_i32_70 = arith.constant 0 : i32
      %145 = tpu.memref_slice %arg4[%144, %c0_i32_70] : memref<512x128xf32, #tpu.memory_space<any>> -> memref<1x128xf32, #tpu.memory_space<any>>
      %c0_i32_71 = arith.constant 0 : i32
      %c0_i32_72 = arith.constant 0 : i32
      %146 = tpu.memref_slice %arg7[%135, %c0_i32_71, %c0_i32_72] : memref<2x10x128xf32, #tpu.memory_space<vmem>> -> memref<1x1x128xf32, #tpu.memory_space<vmem>>
      %147 = tpu.memref_squeeze %146 : memref<1x1x128xf32, #tpu.memory_space<vmem>> -> memref<1x128xf32, #tpu.memory_space<vmem>>
      %148 = tpu.memref_slice %arg8[%135, %c1_i32_69] : memref<2x11x!tpu.dma_semaphore, #tpu.memory_space<semaphore_mem>> -> memref<1x1x!tpu.dma_semaphore, #tpu.memory_space<semaphore_mem>>
      %149 = tpu.memref_squeeze %148 : memref<1x1x!tpu.dma_semaphore, #tpu.memory_space<semaphore_mem>> -> memref<!tpu.dma_semaphore, #tpu.memory_space<semaphore_mem>>
      tpu.enqueue_dma source(%145 : memref<1x128xf32, #tpu.memory_space<any>>) target(%147 : memref<1x128xf32, #tpu.memory_space<vmem>>) target_semaphore(%149 : memref<!tpu.dma_semaphore, #tpu.memory_space<semaphore_mem>>)
      %150 = arith.index_cast %134 : i32 to index
      %c1_73 = arith.constant 1 : index
      %151 = memref.load %arg2[%150, %c1_73] : memref<8x10xi32, #tpu.memory_space<smem>>
      %c2_i32_74 = arith.constant 2 : i32
      %c0_i32_75 = arith.constant 0 : i32
      %152 = tpu.memref_slice %arg4[%151, %c0_i32_75] : memref<512x128xf32, #tpu.memory_space<any>> -> memref<1x128xf32, #tpu.memory_space<any>>
      %c1_i32_76 = arith.constant 1 : i32
      %c0_i32_77 = arith.constant 0 : i32
      %153 = tpu.memref_slice %arg7[%135, %c1_i32_76, %c0_i32_77] : memref<2x10x128xf32, #tpu.memory_space<vmem>> -> memref<1x1x128xf32, #tpu.memory_space<vmem>>
      %154 = tpu.memref_squeeze %153 : memref<1x1x128xf32, #tpu.memory_space<vmem>> -> memref<1x128xf32, #tpu.memory_space<vmem>>
      %155 = tpu.memref_slice %arg8[%135, %c2_i32_74] : memref<2x11x!tpu.dma_semaphore, #tpu.memory_space<semaphore_mem>> -> memref<1x1x!tpu.dma_semaphore, #tpu.memory_space<semaphore_mem>>
      %156 = tpu.memref_squeeze %155 : memref<1x1x!tpu.dma_semaphore, #tpu.memory_space<semaphore_mem>> -> memref<!tpu.dma_semaphore, #tpu.memory_space<semaphore_mem>>
      tpu.enqueue_dma source(%152 : memref<1x128xf32, #tpu.memory_space<any>>) target(%154 : memref<1x128xf32, #tpu.memory_space<vmem>>) target_semaphore(%156 : memref<!tpu.dma_semaphore, #tpu.memory_space<semaphore_mem>>)
      %157 = arith.index_cast %134 : i32 to index
      %c2_78 = arith.constant 2 : index
      %158 = memref.load %arg2[%157, %c2_78] : memref<8x10xi32, #tpu.memory_space<smem>>
      %c3_i32_79 = arith.constant 3 : i32
      %c0_i32_80 = arith.constant 0 : i32
      %159 = tpu.memref_slice %arg4[%158, %c0_i32_80] : memref<512x128xf32, #tpu.memory_space<any>> -> memref<1x128xf32, #tpu.memory_space<any>>
      %c2_i32_81 = arith.constant 2 : i32
      %c0_i32_82 = arith.constant 0 : i32
      %160 = tpu.memref_slice %arg7[%135, %c2_i32_81, %c0_i32_82] : memref<2x10x128xf32, #tpu.memory_space<vmem>> -> memref<1x1x128xf32, #tpu.memory_space<vmem>>
      %161 = tpu.memref_squeeze %160 : memref<1x1x128xf32, #tpu.memory_space<vmem>> -> memref<1x128xf32, #tpu.memory_space<vmem>>
      %162 = tpu.memref_slice %arg8[%135, %c3_i32_79] : memref<2x11x!tpu.dma_semaphore, #tpu.memory_space<semaphore_mem>> -> memref<1x1x!tpu.dma_semaphore, #tpu.memory_space<semaphore_mem>>
      %163 = tpu.memref_squeeze %162 : memref<1x1x!tpu.dma_semaphore, #tpu.memory_space<semaphore_mem>> -> memref<!tpu.dma_semaphore, #tpu.memory_space<semaphore_mem>>
      tpu.enqueue_dma source(%159 : memref<1x128xf32, #tpu.memory_space<any>>) target(%161 : memref<1x128xf32, #tpu.memory_space<vmem>>) target_semaphore(%163 : memref<!tpu.dma_semaphore, #tpu.memory_space<semaphore_mem>>)
      %164 = arith.index_cast %134 : i32 to index
      %c3_83 = arith.constant 3 : index
      %165 = memref.load %arg2[%164, %c3_83] : memref<8x10xi32, #tpu.memory_space<smem>>
      %c4_i32_84 = arith.constant 4 : i32
      %c0_i32_85 = arith.constant 0 : i32
      %166 = tpu.memref_slice %arg4[%165, %c0_i32_85] : memref<512x128xf32, #tpu.memory_space<any>> -> memref<1x128xf32, #tpu.memory_space<any>>
      %c3_i32_86 = arith.constant 3 : i32
      %c0_i32_87 = arith.constant 0 : i32
      %167 = tpu.memref_slice %arg7[%135, %c3_i32_86, %c0_i32_87] : memref<2x10x128xf32, #tpu.memory_space<vmem>> -> memref<1x1x128xf32, #tpu.memory_space<vmem>>
      %168 = tpu.memref_squeeze %167 : memref<1x1x128xf32, #tpu.memory_space<vmem>> -> memref<1x128xf32, #tpu.memory_space<vmem>>
      %169 = tpu.memref_slice %arg8[%135, %c4_i32_84] : memref<2x11x!tpu.dma_semaphore, #tpu.memory_space<semaphore_mem>> -> memref<1x1x!tpu.dma_semaphore, #tpu.memory_space<semaphore_mem>>
      %170 = tpu.memref_squeeze %169 : memref<1x1x!tpu.dma_semaphore, #tpu.memory_space<semaphore_mem>> -> memref<!tpu.dma_semaphore, #tpu.memory_space<semaphore_mem>>
      tpu.enqueue_dma source(%166 : memref<1x128xf32, #tpu.memory_space<any>>) target(%168 : memref<1x128xf32, #tpu.memory_space<vmem>>) target_semaphore(%170 : memref<!tpu.dma_semaphore, #tpu.memory_space<semaphore_mem>>)
      %171 = arith.index_cast %134 : i32 to index
      %c4_88 = arith.constant 4 : index
      %172 = memref.load %arg2[%171, %c4_88] : memref<8x10xi32, #tpu.memory_space<smem>>
      %c5_i32_89 = arith.constant 5 : i32
      %c0_i32_90 = arith.constant 0 : i32
      %173 = tpu.memref_slice %arg4[%172, %c0_i32_90] : memref<512x128xf32, #tpu.memory_space<any>> -> memref<1x128xf32, #tpu.memory_space<any>>
      %c4_i32_91 = arith.constant 4 : i32
      %c0_i32_92 = arith.constant 0 : i32
      %174 = tpu.memref_slice %arg7[%135, %c4_i32_91, %c0_i32_92] : memref<2x10x128xf32, #tpu.memory_space<vmem>> -> memref<1x1x128xf32, #tpu.memory_space<vmem>>
      %175 = tpu.memref_squeeze %174 : memref<1x1x128xf32, #tpu.memory_space<vmem>> -> memref<1x128xf32, #tpu.memory_space<vmem>>
      %176 = tpu.memref_slice %arg8[%135, %c5_i32_89] : memref<2x11x!tpu.dma_semaphore, #tpu.memory_space<semaphore_mem>> -> memref<1x1x!tpu.dma_semaphore, #tpu.memory_space<semaphore_mem>>
      %177 = tpu.memref_squeeze %176 : memref<1x1x!tpu.dma_semaphore, #tpu.memory_space<semaphore_mem>> -> memref<!tpu.dma_semaphore, #tpu.memory_space<semaphore_mem>>
      tpu.enqueue_dma source(%173 : memref<1x128xf32, #tpu.memory_space<any>>) target(%175 : memref<1x128xf32, #tpu.memory_space<vmem>>) target_semaphore(%177 : memref<!tpu.dma_semaphore, #tpu.memory_space<semaphore_mem>>)
      %178 = arith.index_cast %134 : i32 to index
      %c5_93 = arith.constant 5 : index
      %179 = memref.load %arg2[%178, %c5_93] : memref<8x10xi32, #tpu.memory_space<smem>>
      %c6_i32_94 = arith.constant 6 : i32
      %c0_i32_95 = arith.constant 0 : i32
      %180 = tpu.memref_slice %arg4[%179, %c0_i32_95] : memref<512x128xf32, #tpu.memory_space<any>> -> memref<1x128xf32, #tpu.memory_space<any>>
      %c5_i32_96 = arith.constant 5 : i32
      %c0_i32_97 = arith.constant 0 : i32
      %181 = tpu.memref_slice %arg7[%135, %c5_i32_96, %c0_i32_97] : memref<2x10x128xf32, #tpu.memory_space<vmem>> -> memref<1x1x128xf32, #tpu.memory_space<vmem>>
      %182 = tpu.memref_squeeze %181 : memref<1x1x128xf32, #tpu.memory_space<vmem>> -> memref<1x128xf32, #tpu.memory_space<vmem>>
      %183 = tpu.memref_slice %arg8[%135, %c6_i32_94] : memref<2x11x!tpu.dma_semaphore, #tpu.memory_space<semaphore_mem>> -> memref<1x1x!tpu.dma_semaphore, #tpu.memory_space<semaphore_mem>>
      %184 = tpu.memref_squeeze %183 : memref<1x1x!tpu.dma_semaphore, #tpu.memory_space<semaphore_mem>> -> memref<!tpu.dma_semaphore, #tpu.memory_space<semaphore_mem>>
      tpu.enqueue_dma source(%180 : memref<1x128xf32, #tpu.memory_space<any>>) target(%182 : memref<1x128xf32, #tpu.memory_space<vmem>>) target_semaphore(%184 : memref<!tpu.dma_semaphore, #tpu.memory_space<semaphore_mem>>)
      %185 = arith.index_cast %134 : i32 to index
      %c6_98 = arith.constant 6 : index
      %186 = memref.load %arg2[%185, %c6_98] : memref<8x10xi32, #tpu.memory_space<smem>>
      %c7_i32_99 = arith.constant 7 : i32
      %c0_i32_100 = arith.constant 0 : i32
      %187 = tpu.memref_slice %arg4[%186, %c0_i32_100] : memref<512x128xf32, #tpu.memory_space<any>> -> memref<1x128xf32, #tpu.memory_space<any>>
      %c6_i32_101 = arith.constant 6 : i32
      %c0_i32_102 = arith.constant 0 : i32
      %188 = tpu.memref_slice %arg7[%135, %c6_i32_101, %c0_i32_102] : memref<2x10x128xf32, #tpu.memory_space<vmem>> -> memref<1x1x128xf32, #tpu.memory_space<vmem>>
      %189 = tpu.memref_squeeze %188 : memref<1x1x128xf32, #tpu.memory_space<vmem>> -> memref<1x128xf32, #tpu.memory_space<vmem>>
      %190 = tpu.memref_slice %arg8[%135, %c7_i32_99] : memref<2x11x!tpu.dma_semaphore, #tpu.memory_space<semaphore_mem>> -> memref<1x1x!tpu.dma_semaphore, #tpu.memory_space<semaphore_mem>>
      %191 = tpu.memref_squeeze %190 : memref<1x1x!tpu.dma_semaphore, #tpu.memory_space<semaphore_mem>> -> memref<!tpu.dma_semaphore, #tpu.memory_space<semaphore_mem>>
      tpu.enqueue_dma source(%187 : memref<1x128xf32, #tpu.memory_space<any>>) target(%189 : memref<1x128xf32, #tpu.memory_space<vmem>>) target_semaphore(%191 : memref<!tpu.dma_semaphore, #tpu.memory_space<semaphore_mem>>)
      %192 = arith.index_cast %134 : i32 to index
      %c7_103 = arith.constant 7 : index
      %193 = memref.load %arg2[%192, %c7_103] : memref<8x10xi32, #tpu.memory_space<smem>>
      %c8_i32_104 = arith.constant 8 : i32
      %c0_i32_105 = arith.constant 0 : i32
      %194 = tpu.memref_slice %arg4[%193, %c0_i32_105] : memref<512x128xf32, #tpu.memory_space<any>> -> memref<1x128xf32, #tpu.memory_space<any>>
      %c7_i32_106 = arith.constant 7 : i32
      %c0_i32_107 = arith.constant 0 : i32
      %195 = tpu.memref_slice %arg7[%135, %c7_i32_106, %c0_i32_107] : memref<2x10x128xf32, #tpu.memory_space<vmem>> -> memref<1x1x128xf32, #tpu.memory_space<vmem>>
      %196 = tpu.memref_squeeze %195 : memref<1x1x128xf32, #tpu.memory_space<vmem>> -> memref<1x128xf32, #tpu.memory_space<vmem>>
      %197 = tpu.memref_slice %arg8[%135, %c8_i32_104] : memref<2x11x!tpu.dma_semaphore, #tpu.memory_space<semaphore_mem>> -> memref<1x1x!tpu.dma_semaphore, #tpu.memory_space<semaphore_mem>>
      %198 = tpu.memref_squeeze %197 : memref<1x1x!tpu.dma_semaphore, #tpu.memory_space<semaphore_mem>> -> memref<!tpu.dma_semaphore, #tpu.memory_space<semaphore_mem>>
      tpu.enqueue_dma source(%194 : memref<1x128xf32, #tpu.memory_space<any>>) target(%196 : memref<1x128xf32, #tpu.memory_space<vmem>>) target_semaphore(%198 : memref<!tpu.dma_semaphore, #tpu.memory_space<semaphore_mem>>)
      %199 = arith.index_cast %134 : i32 to index
      %c8_108 = arith.constant 8 : index
      %200 = memref.load %arg2[%199, %c8_108] : memref<8x10xi32, #tpu.memory_space<smem>>
      %c9_i32_109 = arith.constant 9 : i32
      %c0_i32_110 = arith.constant 0 : i32
      %201 = tpu.memref_slice %arg4[%200, %c0_i32_110] : memref<512x128xf32, #tpu.memory_space<any>> -> memref<1x128xf32, #tpu.memory_space<any>>
      %c8_i32_111 = arith.constant 8 : i32
      %c0_i32_112 = arith.constant 0 : i32
      %202 = tpu.memref_slice %arg7[%135, %c8_i32_111, %c0_i32_112] : memref<2x10x128xf32, #tpu.memory_space<vmem>> -> memref<1x1x128xf32, #tpu.memory_space<vmem>>
      %203 = tpu.memref_squeeze %202 : memref<1x1x128xf32, #tpu.memory_space<vmem>> -> memref<1x128xf32, #tpu.memory_space<vmem>>
      %204 = tpu.memref_slice %arg8[%135, %c9_i32_109] : memref<2x11x!tpu.dma_semaphore, #tpu.memory_space<semaphore_mem>> -> memref<1x1x!tpu.dma_semaphore, #tpu.memory_space<semaphore_mem>>
      %205 = tpu.memref_squeeze %204 : memref<1x1x!tpu.dma_semaphore, #tpu.memory_space<semaphore_mem>> -> memref<!tpu.dma_semaphore, #tpu.memory_space<semaphore_mem>>
      tpu.enqueue_dma source(%201 : memref<1x128xf32, #tpu.memory_space<any>>) target(%203 : memref<1x128xf32, #tpu.memory_space<vmem>>) target_semaphore(%205 : memref<!tpu.dma_semaphore, #tpu.memory_space<semaphore_mem>>)
      %206 = arith.index_cast %134 : i32 to index
      %c9_113 = arith.constant 9 : index
      %207 = memref.load %arg2[%206, %c9_113] : memref<8x10xi32, #tpu.memory_space<smem>>
      %c10_i32_114 = arith.constant 10 : i32
      %c0_i32_115 = arith.constant 0 : i32
      %208 = tpu.memref_slice %arg4[%207, %c0_i32_115] : memref<512x128xf32, #tpu.memory_space<any>> -> memref<1x128xf32, #tpu.memory_space<any>>
      %c9_i32_116 = arith.constant 9 : i32
      %c0_i32_117 = arith.constant 0 : i32
      %209 = tpu.memref_slice %arg7[%135, %c9_i32_116, %c0_i32_117] : memref<2x10x128xf32, #tpu.memory_space<vmem>> -> memref<1x1x128xf32, #tpu.memory_space<vmem>>
      %210 = tpu.memref_squeeze %209 : memref<1x1x128xf32, #tpu.memory_space<vmem>> -> memref<1x128xf32, #tpu.memory_space<vmem>>
      %211 = tpu.memref_slice %arg8[%135, %c10_i32_114] : memref<2x11x!tpu.dma_semaphore, #tpu.memory_space<semaphore_mem>> -> memref<1x1x!tpu.dma_semaphore, #tpu.memory_space<semaphore_mem>>
      %212 = tpu.memref_squeeze %211 : memref<1x1x!tpu.dma_semaphore, #tpu.memory_space<semaphore_mem>> -> memref<!tpu.dma_semaphore, #tpu.memory_space<semaphore_mem>>
      tpu.enqueue_dma source(%208 : memref<1x128xf32, #tpu.memory_space<any>>) target(%210 : memref<1x128xf32, #tpu.memory_space<vmem>>) target_semaphore(%212 : memref<!tpu.dma_semaphore, #tpu.memory_space<semaphore_mem>>)
    } else {
    }
    %17 = arith.index_cast %arg0 : i32 to index
    %18 = memref.load %arg1[%17] : memref<8xi32, #tpu.memory_space<smem>>
    %c0_i32_7 = arith.constant 0 : i32
    %c0_i32_8 = arith.constant 0 : i32
    %19 = tpu.memref_slice %arg3[%18, %c0_i32_8] : memref<512x128xf32, #tpu.memory_space<any>> -> memref<1x128xf32, #tpu.memory_space<any>>
    %c0_i32_9 = arith.constant 0 : i32
    %c0_i32_10 = arith.constant 0 : i32
    %20 = tpu.memref_slice %arg6[%9, %c0_i32_9, %c0_i32_10] : memref<2x1x128xf32, #tpu.memory_space<vmem>> -> memref<1x1x128xf32, #tpu.memory_space<vmem>>
    %21 = tpu.memref_squeeze %20 : memref<1x1x128xf32, #tpu.memory_space<vmem>> -> memref<1x128xf32, #tpu.memory_space<vmem>>
    %22 = tpu.memref_slice %arg8[%9, %c0_i32_7] : memref<2x11x!tpu.dma_semaphore, #tpu.memory_space<semaphore_mem>> -> memref<1x1x!tpu.dma_semaphore, #tpu.memory_space<semaphore_mem>>
    %23 = tpu.memref_squeeze %22 : memref<1x1x!tpu.dma_semaphore, #tpu.memory_space<semaphore_mem>> -> memref<!tpu.dma_semaphore, #tpu.memory_space<semaphore_mem>>
    tpu.wait_dma2 semaphore(%23 : memref<!tpu.dma_semaphore, #tpu.memory_space<semaphore_mem>>) src(%19 : memref<1x128xf32, #tpu.memory_space<any>>) dst(%21 : memref<1x128xf32, #tpu.memory_space<vmem>>)
    %24 = arith.index_cast %arg0 : i32 to index
    %c0 = arith.constant 0 : index
    %25 = memref.load %arg2[%24, %c0] : memref<8x10xi32, #tpu.memory_space<smem>>
    %c1_i32_11 = arith.constant 1 : i32
    %c0_i32_12 = arith.constant 0 : i32
    %26 = tpu.memref_slice %arg4[%25, %c0_i32_12] : memref<512x128xf32, #tpu.memory_space<any>> -> memref<1x128xf32, #tpu.memory_space<any>>
    %c0_i32_13 = arith.constant 0 : i32
    %c0_i32_14 = arith.constant 0 : i32
    %27 = tpu.memref_slice %arg7[%9, %c0_i32_13, %c0_i32_14] : memref<2x10x128xf32, #tpu.memory_space<vmem>> -> memref<1x1x128xf32, #tpu.memory_space<vmem>>
    %28 = tpu.memref_squeeze %27 : memref<1x1x128xf32, #tpu.memory_space<vmem>> -> memref<1x128xf32, #tpu.memory_space<vmem>>
    %29 = tpu.memref_slice %arg8[%9, %c1_i32_11] : memref<2x11x!tpu.dma_semaphore, #tpu.memory_space<semaphore_mem>> -> memref<1x1x!tpu.dma_semaphore, #tpu.memory_space<semaphore_mem>>
    %30 = tpu.memref_squeeze %29 : memref<1x1x!tpu.dma_semaphore, #tpu.memory_space<semaphore_mem>> -> memref<!tpu.dma_semaphore, #tpu.memory_space<semaphore_mem>>
    tpu.wait_dma2 semaphore(%30 : memref<!tpu.dma_semaphore, #tpu.memory_space<semaphore_mem>>) src(%26 : memref<1x128xf32, #tpu.memory_space<any>>) dst(%28 : memref<1x128xf32, #tpu.memory_space<vmem>>)
    %31 = arith.index_cast %arg0 : i32 to index
    %c1 = arith.constant 1 : index
    %32 = memref.load %arg2[%31, %c1] : memref<8x10xi32, #tpu.memory_space<smem>>
    %c2_i32_15 = arith.constant 2 : i32
    %c0_i32_16 = arith.constant 0 : i32
    %33 = tpu.memref_slice %arg4[%32, %c0_i32_16] : memref<512x128xf32, #tpu.memory_space<any>> -> memref<1x128xf32, #tpu.memory_space<any>>
    %c1_i32_17 = arith.constant 1 : i32
    %c0_i32_18 = arith.constant 0 : i32
    %34 = tpu.memref_slice %arg7[%9, %c1_i32_17, %c0_i32_18] : memref<2x10x128xf32, #tpu.memory_space<vmem>> -> memref<1x1x128xf32, #tpu.memory_space<vmem>>
    %35 = tpu.memref_squeeze %34 : memref<1x1x128xf32, #tpu.memory_space<vmem>> -> memref<1x128xf32, #tpu.memory_space<vmem>>
    %36 = tpu.memref_slice %arg8[%9, %c2_i32_15] : memref<2x11x!tpu.dma_semaphore, #tpu.memory_space<semaphore_mem>> -> memref<1x1x!tpu.dma_semaphore, #tpu.memory_space<semaphore_mem>>
    %37 = tpu.memref_squeeze %36 : memref<1x1x!tpu.dma_semaphore, #tpu.memory_space<semaphore_mem>> -> memref<!tpu.dma_semaphore, #tpu.memory_space<semaphore_mem>>
    tpu.wait_dma2 semaphore(%37 : memref<!tpu.dma_semaphore, #tpu.memory_space<semaphore_mem>>) src(%33 : memref<1x128xf32, #tpu.memory_space<any>>) dst(%35 : memref<1x128xf32, #tpu.memory_space<vmem>>)
    %38 = arith.index_cast %arg0 : i32 to index
    %c2 = arith.constant 2 : index
    %39 = memref.load %arg2[%38, %c2] : memref<8x10xi32, #tpu.memory_space<smem>>
    %c3_i32 = arith.constant 3 : i32
    %c0_i32_19 = arith.constant 0 : i32
    %40 = tpu.memref_slice %arg4[%39, %c0_i32_19] : memref<512x128xf32, #tpu.memory_space<any>> -> memref<1x128xf32, #tpu.memory_space<any>>
    %c2_i32_20 = arith.constant 2 : i32
    %c0_i32_21 = arith.constant 0 : i32
    %41 = tpu.memref_slice %arg7[%9, %c2_i32_20, %c0_i32_21] : memref<2x10x128xf32, #tpu.memory_space<vmem>> -> memref<1x1x128xf32, #tpu.memory_space<vmem>>
    %42 = tpu.memref_squeeze %41 : memref<1x1x128xf32, #tpu.memory_space<vmem>> -> memref<1x128xf32, #tpu.memory_space<vmem>>
    %43 = tpu.memref_slice %arg8[%9, %c3_i32] : memref<2x11x!tpu.dma_semaphore, #tpu.memory_space<semaphore_mem>> -> memref<1x1x!tpu.dma_semaphore, #tpu.memory_space<semaphore_mem>>
    %44 = tpu.memref_squeeze %43 : memref<1x1x!tpu.dma_semaphore, #tpu.memory_space<semaphore_mem>> -> memref<!tpu.dma_semaphore, #tpu.memory_space<semaphore_mem>>
    tpu.wait_dma2 semaphore(%44 : memref<!tpu.dma_semaphore, #tpu.memory_space<semaphore_mem>>) src(%40 : memref<1x128xf32, #tpu.memory_space<any>>) dst(%42 : memref<1x128xf32, #tpu.memory_space<vmem>>)
    %45 = arith.index_cast %arg0 : i32 to index
    %c3 = arith.constant 3 : index
    %46 = memref.load %arg2[%45, %c3] : memref<8x10xi32, #tpu.memory_space<smem>>
    %c4_i32 = arith.constant 4 : i32
    %c0_i32_22 = arith.constant 0 : i32
    %47 = tpu.memref_slice %arg4[%46, %c0_i32_22] : memref<512x128xf32, #tpu.memory_space<any>> -> memref<1x128xf32, #tpu.memory_space<any>>
    %c3_i32_23 = arith.constant 3 : i32
    %c0_i32_24 = arith.constant 0 : i32
    %48 = tpu.memref_slice %arg7[%9, %c3_i32_23, %c0_i32_24] : memref<2x10x128xf32, #tpu.memory_space<vmem>> -> memref<1x1x128xf32, #tpu.memory_space<vmem>>
    %49 = tpu.memref_squeeze %48 : memref<1x1x128xf32, #tpu.memory_space<vmem>> -> memref<1x128xf32, #tpu.memory_space<vmem>>
    %50 = tpu.memref_slice %arg8[%9, %c4_i32] : memref<2x11x!tpu.dma_semaphore, #tpu.memory_space<semaphore_mem>> -> memref<1x1x!tpu.dma_semaphore, #tpu.memory_space<semaphore_mem>>
    %51 = tpu.memref_squeeze %50 : memref<1x1x!tpu.dma_semaphore, #tpu.memory_space<semaphore_mem>> -> memref<!tpu.dma_semaphore, #tpu.memory_space<semaphore_mem>>
    tpu.wait_dma2 semaphore(%51 : memref<!tpu.dma_semaphore, #tpu.memory_space<semaphore_mem>>) src(%47 : memref<1x128xf32, #tpu.memory_space<any>>) dst(%49 : memref<1x128xf32, #tpu.memory_space<vmem>>)
    %52 = arith.index_cast %arg0 : i32 to index
    %c4 = arith.constant 4 : index
    %53 = memref.load %arg2[%52, %c4] : memref<8x10xi32, #tpu.memory_space<smem>>
    %c5_i32 = arith.constant 5 : i32
    %c0_i32_25 = arith.constant 0 : i32
    %54 = tpu.memref_slice %arg4[%53, %c0_i32_25] : memref<512x128xf32, #tpu.memory_space<any>> -> memref<1x128xf32, #tpu.memory_space<any>>
    %c4_i32_26 = arith.constant 4 : i32
    %c0_i32_27 = arith.constant 0 : i32
    %55 = tpu.memref_slice %arg7[%9, %c4_i32_26, %c0_i32_27] : memref<2x10x128xf32, #tpu.memory_space<vmem>> -> memref<1x1x128xf32, #tpu.memory_space<vmem>>
    %56 = tpu.memref_squeeze %55 : memref<1x1x128xf32, #tpu.memory_space<vmem>> -> memref<1x128xf32, #tpu.memory_space<vmem>>
    %57 = tpu.memref_slice %arg8[%9, %c5_i32] : memref<2x11x!tpu.dma_semaphore, #tpu.memory_space<semaphore_mem>> -> memref<1x1x!tpu.dma_semaphore, #tpu.memory_space<semaphore_mem>>
    %58 = tpu.memref_squeeze %57 : memref<1x1x!tpu.dma_semaphore, #tpu.memory_space<semaphore_mem>> -> memref<!tpu.dma_semaphore, #tpu.memory_space<semaphore_mem>>
    tpu.wait_dma2 semaphore(%58 : memref<!tpu.dma_semaphore, #tpu.memory_space<semaphore_mem>>) src(%54 : memref<1x128xf32, #tpu.memory_space<any>>) dst(%56 : memref<1x128xf32, #tpu.memory_space<vmem>>)
    %59 = arith.index_cast %arg0 : i32 to index
    %c5 = arith.constant 5 : index
    %60 = memref.load %arg2[%59, %c5] : memref<8x10xi32, #tpu.memory_space<smem>>
    %c6_i32 = arith.constant 6 : i32
    %c0_i32_28 = arith.constant 0 : i32
    %61 = tpu.memref_slice %arg4[%60, %c0_i32_28] : memref<512x128xf32, #tpu.memory_space<any>> -> memref<1x128xf32, #tpu.memory_space<any>>
    %c5_i32_29 = arith.constant 5 : i32
    %c0_i32_30 = arith.constant 0 : i32
    %62 = tpu.memref_slice %arg7[%9, %c5_i32_29, %c0_i32_30] : memref<2x10x128xf32, #tpu.memory_space<vmem>> -> memref<1x1x128xf32, #tpu.memory_space<vmem>>
    %63 = tpu.memref_squeeze %62 : memref<1x1x128xf32, #tpu.memory_space<vmem>> -> memref<1x128xf32, #tpu.memory_space<vmem>>
    %64 = tpu.memref_slice %arg8[%9, %c6_i32] : memref<2x11x!tpu.dma_semaphore, #tpu.memory_space<semaphore_mem>> -> memref<1x1x!tpu.dma_semaphore, #tpu.memory_space<semaphore_mem>>
    %65 = tpu.memref_squeeze %64 : memref<1x1x!tpu.dma_semaphore, #tpu.memory_space<semaphore_mem>> -> memref<!tpu.dma_semaphore, #tpu.memory_space<semaphore_mem>>
    tpu.wait_dma2 semaphore(%65 : memref<!tpu.dma_semaphore, #tpu.memory_space<semaphore_mem>>) src(%61 : memref<1x128xf32, #tpu.memory_space<any>>) dst(%63 : memref<1x128xf32, #tpu.memory_space<vmem>>)
    %66 = arith.index_cast %arg0 : i32 to index
    %c6 = arith.constant 6 : index
    %67 = memref.load %arg2[%66, %c6] : memref<8x10xi32, #tpu.memory_space<smem>>
    %c7_i32 = arith.constant 7 : i32
    %c0_i32_31 = arith.constant 0 : i32
    %68 = tpu.memref_slice %arg4[%67, %c0_i32_31] : memref<512x128xf32, #tpu.memory_space<any>> -> memref<1x128xf32, #tpu.memory_space<any>>
    %c6_i32_32 = arith.constant 6 : i32
    %c0_i32_33 = arith.constant 0 : i32
    %69 = tpu.memref_slice %arg7[%9, %c6_i32_32, %c0_i32_33] : memref<2x10x128xf32, #tpu.memory_space<vmem>> -> memref<1x1x128xf32, #tpu.memory_space<vmem>>
    %70 = tpu.memref_squeeze %69 : memref<1x1x128xf32, #tpu.memory_space<vmem>> -> memref<1x128xf32, #tpu.memory_space<vmem>>
    %71 = tpu.memref_slice %arg8[%9, %c7_i32] : memref<2x11x!tpu.dma_semaphore, #tpu.memory_space<semaphore_mem>> -> memref<1x1x!tpu.dma_semaphore, #tpu.memory_space<semaphore_mem>>
    %72 = tpu.memref_squeeze %71 : memref<1x1x!tpu.dma_semaphore, #tpu.memory_space<semaphore_mem>> -> memref<!tpu.dma_semaphore, #tpu.memory_space<semaphore_mem>>
    tpu.wait_dma2 semaphore(%72 : memref<!tpu.dma_semaphore, #tpu.memory_space<semaphore_mem>>) src(%68 : memref<1x128xf32, #tpu.memory_space<any>>) dst(%70 : memref<1x128xf32, #tpu.memory_space<vmem>>)
    %73 = arith.index_cast %arg0 : i32 to index
    %c7 = arith.constant 7 : index
    %74 = memref.load %arg2[%73, %c7] : memref<8x10xi32, #tpu.memory_space<smem>>
    %c8_i32_34 = arith.constant 8 : i32
    %c0_i32_35 = arith.constant 0 : i32
    %75 = tpu.memref_slice %arg4[%74, %c0_i32_35] : memref<512x128xf32, #tpu.memory_space<any>> -> memref<1x128xf32, #tpu.memory_space<any>>
    %c7_i32_36 = arith.constant 7 : i32
    %c0_i32_37 = arith.constant 0 : i32
    %76 = tpu.memref_slice %arg7[%9, %c7_i32_36, %c0_i32_37] : memref<2x10x128xf32, #tpu.memory_space<vmem>> -> memref<1x1x128xf32, #tpu.memory_space<vmem>>
    %77 = tpu.memref_squeeze %76 : memref<1x1x128xf32, #tpu.memory_space<vmem>> -> memref<1x128xf32, #tpu.memory_space<vmem>>
    %78 = tpu.memref_slice %arg8[%9, %c8_i32_34] : memref<2x11x!tpu.dma_semaphore, #tpu.memory_space<semaphore_mem>> -> memref<1x1x!tpu.dma_semaphore, #tpu.memory_space<semaphore_mem>>
    %79 = tpu.memref_squeeze %78 : memref<1x1x!tpu.dma_semaphore, #tpu.memory_space<semaphore_mem>> -> memref<!tpu.dma_semaphore, #tpu.memory_space<semaphore_mem>>
    tpu.wait_dma2 semaphore(%79 : memref<!tpu.dma_semaphore, #tpu.memory_space<semaphore_mem>>) src(%75 : memref<1x128xf32, #tpu.memory_space<any>>) dst(%77 : memref<1x128xf32, #tpu.memory_space<vmem>>)
    %80 = arith.index_cast %arg0 : i32 to index
    %c8 = arith.constant 8 : index
    %81 = memref.load %arg2[%80, %c8] : memref<8x10xi32, #tpu.memory_space<smem>>
    %c9_i32 = arith.constant 9 : i32
    %c0_i32_38 = arith.constant 0 : i32
    %82 = tpu.memref_slice %arg4[%81, %c0_i32_38] : memref<512x128xf32, #tpu.memory_space<any>> -> memref<1x128xf32, #tpu.memory_space<any>>
    %c8_i32_39 = arith.constant 8 : i32
    %c0_i32_40 = arith.constant 0 : i32
    %83 = tpu.memref_slice %arg7[%9, %c8_i32_39, %c0_i32_40] : memref<2x10x128xf32, #tpu.memory_space<vmem>> -> memref<1x1x128xf32, #tpu.memory_space<vmem>>
    %84 = tpu.memref_squeeze %83 : memref<1x1x128xf32, #tpu.memory_space<vmem>> -> memref<1x128xf32, #tpu.memory_space<vmem>>
    %85 = tpu.memref_slice %arg8[%9, %c9_i32] : memref<2x11x!tpu.dma_semaphore, #tpu.memory_space<semaphore_mem>> -> memref<1x1x!tpu.dma_semaphore, #tpu.memory_space<semaphore_mem>>
    %86 = tpu.memref_squeeze %85 : memref<1x1x!tpu.dma_semaphore, #tpu.memory_space<semaphore_mem>> -> memref<!tpu.dma_semaphore, #tpu.memory_space<semaphore_mem>>
    tpu.wait_dma2 semaphore(%86 : memref<!tpu.dma_semaphore, #tpu.memory_space<semaphore_mem>>) src(%82 : memref<1x128xf32, #tpu.memory_space<any>>) dst(%84 : memref<1x128xf32, #tpu.memory_space<vmem>>)
    %87 = arith.index_cast %arg0 : i32 to index
    %c9 = arith.constant 9 : index
    %88 = memref.load %arg2[%87, %c9] : memref<8x10xi32, #tpu.memory_space<smem>>
    %c10_i32 = arith.constant 10 : i32
    %c0_i32_41 = arith.constant 0 : i32
    %89 = tpu.memref_slice %arg4[%88, %c0_i32_41] : memref<512x128xf32, #tpu.memory_space<any>> -> memref<1x128xf32, #tpu.memory_space<any>>
    %c9_i32_42 = arith.constant 9 : i32
    %c0_i32_43 = arith.constant 0 : i32
    %90 = tpu.memref_slice %arg7[%9, %c9_i32_42, %c0_i32_43] : memref<2x10x128xf32, #tpu.memory_space<vmem>> -> memref<1x1x128xf32, #tpu.memory_space<vmem>>
    %91 = tpu.memref_squeeze %90 : memref<1x1x128xf32, #tpu.memory_space<vmem>> -> memref<1x128xf32, #tpu.memory_space<vmem>>
    %92 = tpu.memref_slice %arg8[%9, %c10_i32] : memref<2x11x!tpu.dma_semaphore, #tpu.memory_space<semaphore_mem>> -> memref<1x1x!tpu.dma_semaphore, #tpu.memory_space<semaphore_mem>>
    %93 = tpu.memref_squeeze %92 : memref<1x1x!tpu.dma_semaphore, #tpu.memory_space<semaphore_mem>> -> memref<!tpu.dma_semaphore, #tpu.memory_space<semaphore_mem>>
    tpu.wait_dma2 semaphore(%93 : memref<!tpu.dma_semaphore, #tpu.memory_space<semaphore_mem>>) src(%89 : memref<1x128xf32, #tpu.memory_space<any>>) dst(%91 : memref<1x128xf32, #tpu.memory_space<vmem>>)
    %94 = arith.index_cast %9 : i32 to index
    %c0_44 = arith.constant 0 : index
    %c0_45 = arith.constant 0 : index
    %95 = vector.load %arg6[%94, %c0_44, %c0_45] : memref<2x1x128xf32, #tpu.memory_space<vmem>>, vector<1x1x128xf32>
    %96 = vector.shape_cast %95 : vector<1x1x128xf32> to vector<1x128xf32>
    %97 = arith.index_cast %9 : i32 to index
    %c0_46 = arith.constant 0 : index
    %c0_47 = arith.constant 0 : index
    %98 = vector.load %arg7[%97, %c0_46, %c0_47] : memref<2x10x128xf32, #tpu.memory_space<vmem>>, vector<1x10x128xf32>
    %99 = vector.shape_cast %98 : vector<1x10x128xf32> to vector<10x128xf32>
    %100 = vector.broadcast %96 : vector<1x128xf32> to vector<10x128xf32>
    %101 = arith.mulf %99, %100 : vector<10x128xf32>
    %cst = arith.constant dense<0.000000e+00> : vector<10xf32>
    %102 = vector.multi_reduction <add>, %101, %cst [1] : vector<10x128xf32> to vector<10xf32>
    %103 = vector.shape_cast %102 : vector<10xf32> to vector<10x1xf32>
    %104 = tpu.iota {dimensions = array<i32: 0>} : vector<10x1xi32>
    %c4_i32_48 = arith.constant 4 : i32
    %105 = vector.broadcast %c4_i32_48 : i32 to vector<10x1xi32>
    %106 = arith.cmpi slt, %104, %105 : vector<10x1xi32>
    %cst_49 = arith.constant 0.000000e+00 : f32
    %107 = vector.broadcast %cst_49 : f32 to vector<10x1xf32>
    %108 = arith.subf %107, %103 : vector<10x1xf32>
    %109 = arith.select %106, %103, %108 : vector<10x1xi1>, vector<10x1xf32>
    %cst_50 = arith.constant 3.125000e-02 : f32
    %cst_51 = arith.constant 0.020833334 : f32
    %110 = vector.broadcast %cst_50 : f32 to vector<10x1xf32>
    %111 = vector.broadcast %cst_51 : f32 to vector<10x1xf32>
    %112 = arith.select %106, %110, %111 : vector<10x1xi1>, vector<10x1xf32>
    %cst_52 = arith.constant 0.000000e+00 : f32
    %113 = vector.broadcast %cst_52 : f32 to vector<10x1xf32>
    %114 = arith.minimumf %109, %113 : vector<10x1xf32>
    %115 = math.absf %109 : vector<10x1xf32>
    %cst_53 = arith.constant 0.000000e+00 : f32
    %116 = vector.broadcast %cst_53 : f32 to vector<10x1xf32>
    %117 = arith.subf %116, %115 : vector<10x1xf32>
    %118 = math.exp %117 : vector<10x1xf32>
    %cst_54 = arith.constant 1.000000e+00 : f32
    %119 = vector.broadcast %cst_54 : f32 to vector<10x1xf32>
    %120 = arith.addf %119, %118 : vector<10x1xf32>
    %121 = math.log %120 : vector<10x1xf32>
    %122 = arith.subf %114, %121 : vector<10x1xf32>
    %123 = arith.mulf %122, %112 : vector<10x1xf32>
    %124 = vector.shape_cast %123 : vector<10x1xf32> to vector<1x10x1xf32>
    %cst_55 = arith.constant dense<0.000000e+00> : vector<1xf32>
    %125 = vector.multi_reduction <add>, %124, %cst_55 [1, 2] : vector<1x10x1xf32> to vector<1xf32>
    %126 = vector.shape_cast %125 : vector<1xf32> to vector<1x1x1xf32>
    %127 = vector.extract %126[0, 0, 0] : f32 from vector<1x1x1xf32>
    %c0_56 = arith.constant 0 : index
    %c0_57 = arith.constant 0 : index
    %128 = memref.load %arg5[%c0_56, %c0_57] : memref<1x1xf32, #tpu.memory_space<smem>>
    %129 = arith.addf %128, %127 : f32
    %c0_58 = arith.constant 0 : index
    %c0_59 = arith.constant 0 : index
    %130 = memref.load %arg5[%c0_58, %c0_59] : memref<1x1xf32, #tpu.memory_space<smem>>
    memref.store %129, %arg5[%c0_58, %c0_59] : memref<1x1xf32, #tpu.memory_space<smem>>
    %c7_i32_60 = arith.constant 7 : i32
    %131 = arith.cmpi eq, %arg0, %c7_i32_60 : i32
    %132 = arith.extui %131 : i1 to i32
    %c0_i32_61 = arith.constant 0 : i32
    %133 = arith.cmpi ne, %132, %c0_i32_61 : i32
    scf.if %133 {
      %c0_62 = arith.constant 0 : index
      %c0_63 = arith.constant 0 : index
      %134 = memref.load %arg5[%c0_62, %c0_63] : memref<1x1xf32, #tpu.memory_space<smem>>
      %cst_64 = arith.constant 0.000000e+00 : f32
      %135 = arith.subf %cst_64, %134 : f32
      %c0_65 = arith.constant 0 : index
      %c0_66 = arith.constant 0 : index
      %136 = memref.load %arg5[%c0_65, %c0_66] : memref<1x1xf32, #tpu.memory_space<smem>>
      memref.store %135, %arg5[%c0_65, %c0_66] : memref<1x1xf32, #tpu.memory_space<smem>>
    } else {
    }
    return
  }
  func.func @transform_2(%arg0: i32, %arg1: memref<8xi32, #tpu.memory_space<smem>>, %arg2: memref<8x10xi32, #tpu.memory_space<smem>>) -> (i32, i32) {
    %c0_i32 = arith.constant 0 : i32
    %c0_i32_0 = arith.constant 0 : i32
    %c0_i32_1 = arith.constant 0 : i32
    return %c0_i32, %c0_i32_0 : i32, i32
  }
}

</mosaic_0001>

<bundles_post_ra>
// kernel: tpu_custom_call.1
= control target key start
LH: loop header
LB: loop body
LE: loop exit
PB: predicated region body
PF: predicated region fallthrough
CT: control target
= control target key end

     0   :  { %s2524_s0 = inlined_call_operand.hbm [shape: s32[8], index: 0, kind: input, shape index: {}]   ;;  %s2525_s2 = inlined_call_operand.hbm [shape: f32[512,128], index: 2, kind: input, shape index: {}]   ;;  %s2526_s3 = inlined_call_operand.hbm [shape: f32[512,128], index: 3, kind: input, shape index: {}]   ;;  %s2527_s4 = inlined_call_operand.hbm [shape: f32[1,1], index: 4, kind: output, shape index: {}]   ;;  %s2528_s1 = inlined_call_operand.hbm [shape: s32[8,10], index: 1, kind: input, shape index: {}]  }
   0x1   :  { %s1082_s17 = scalar_lea.hbm %s2524_s0, 16 }
   0x2   :  { %p1083_p0 = scmp.ne.s32.totalorder %s2524_s0, %s1082_s17  ;;  %p1086_p1 = scmp.lt.u32.totalorder %s1082_s17, %s2524_s0 }
   0x4   :  { %p1088_p2 = pnand %p1086_p1, %p1083_p0 }
   0x6   :  { %1091 = shalt.err (!%p1088_p2)  }
   0x7   :  { %s1766_s22 = smov [#allocation6]   ;;  %s1092_s27 = scalar_lea.hbm %s2528_s1, 128 }
   0x8   :  { %10 = dma.hbm_to_smem %s2524_s0, 16, %s1766_s22, [#allocation5] }
   0x9   :  { %p1093_p3 = scmp.ne.s32.totalorder %s2528_s1, %s1092_s27  ;;  %p1096_p4 = scmp.lt.u32.totalorder %s1092_s27, %s2528_s1 }
   0xb   :  { %p1098_p5 = pnand %p1096_p4, %p1093_p3 }
   0xd   :  { %1101 = shalt.err (!%p1098_p5)  }
   0xe   :  { %s1767_s6 = smov [#allocation7]  }
   0xf   :  { %12 = dma.hbm_to_smem %s2528_s1, 128, %s1767_s6, [#allocation5] }
  0x10   :  { %1734 = dma.done.wait [#allocation5], 144 }
  0x11   :  { %1735 = vsyncadd [#allocation5], 4294967152 }
  0x12   :  { %14 = sfence }
  0x13   :  { %15 = vsyncpa [#allocation9], 0  ;;  %s1831_s0 = smov 0  }
  0x14 LB: > { %p911_p6 = scmp.ge.s32.totalorder %s1764_s0, 8  ;;  %s1764_s0 = sphi %s1831_s0, %s21_s0  }
  0x15   : > { %p1045_p7 = scmp.eq.s32.totalorder (!%p911_p6), %s1764_s0, 0  ;;  %s62_s9 = sld [smem:[#allocation6]] (!%p911_p6) }
  0x16   : > { %41 = sbr.rel (%p911_p6) target bundleno = 1029 (0x405), region = 12  ;;  %s1768_s10 = smov (!%p911_p6), 0.0  }
  0x17   : > { %s1769_s1 = smov (!%p911_p6), [#allocation2]   ;;  %s1840_s12 = sld [smem:[#allocation7]] (!%p911_p6) }
  0x18   : > { %s72_s11 = sshll.u32 (!%p911_p6), %s1769_s1, 4  ;;  %s1770_s13 = smov (!%p911_p6), [#allocation3]   ;;  %s1842_s11 = int_to_ptr.vmem [resolvable:$true] %s72_s11 }
  0x19   : > { %s87_s14 = sshll.u32 (!%p911_p6), %s1770_s13, 4  ;;  %s1844_s15 = sld [smem:[#allocation7 + $0x1]] (!%p911_p6)  ;;  %s1846_s14 = int_to_ptr.vmem [resolvable:$true] %s87_s14 }
  0x1a   : > { %s1771_s17 = smov (!%p911_p6), [#allocation3 + $0x1]   ;;  %s1106_s25 = scalar_lea.hbm (!%p911_p6), %s2525_s2, 8192 }
  0x1b   : > { %s916_s16 = sshll.u32 (!%p911_p6), %s62_s9, 4  ;;  %s103_s18 = sshll.u32 (!%p911_p6), %s1771_s17, 4  ;;  %s1851_s18 = int_to_ptr.vmem [resolvable:$true] %s103_s18 }
  0x1c   : > { %s64_s21 = scalar_lea.hbm (!%p911_p6), %s2525_s2, %s916_s16 }
  0x1d   : > { %993 = sst [smem:[#allocation8]] (%p1045_p7), %s1768_s10  ;;  %s1102_s22 = scalar_lea.hbm %s64_s21, 16 }
  0x1e   : > { %p1103_p8 = scmp.ne.s32.totalorder %s64_s21, %s1102_s22  ;;  %p1107_p11 = scmp.lt.u32.totalorder %s64_s21, %s2525_s2 }
  0x1f   : > { %p1108_p12 = scmp.lt.u32.totalorder %s1106_s25, %s1102_s22  ;;  %p1110_p0 = scmp.lt.u32.totalorder %s1102_s22, %s64_s21 }
  0x20   : > { %p1104_p9 = pnand %p1103_p8, %p1045_p7 }
  0x21   : > { %p1109_p13 = por %p1108_p12, %p1107_p11 }
  0x22   : > { %p1105_p10 = pneg %p1104_p9 }
  0x23   : > { %p1111_p1 = por %p1110_p0, %p1109_p13 }
  0x25   : > { %p1112_p2 = pnand %p1111_p1, %p1105_p10 }
  0x27   : > { %1115 = shalt.err (!%p1112_p2)  }
  0x28   : > { %s1116_s30 = scalar_lea.vmem %s1842_s11, 16  ;;  %s1122_s5 = scalar_lea.vmem %s1842_s11, 32 }
  0x29   : > { %p1117_p3 = scmp.ne.s32.totalorder %s1842_s11, %s1116_s30  ;;  %p1123_p6 = scmp.lt.s32.totalorder %s1842_s11, %s1842_s11 }
  0x2a   : > { %p1124_p8 = scmp.lt.s32.totalorder %s1122_s5, %s1116_s30 }
  0x2b   : > { %p1118_p4 = pnand %p1117_p3, %p1045_p7 }
  0x2c   : > { %p1125_p9 = por %p1124_p8, %p1123_p6 }
  0x2d   : > { %p1119_p5 = pneg %p1118_p4 }
  0x2f   : > { %p1126_p11 = pnand %p1125_p9, %p1119_p5 }
  0x31   : > { %1129 = shalt.err (!%p1126_p11)  }
  0x32   : > { %994 = dma.hbm_to_vmem [thread:$0]  (%p1045_p7), %s64_s21, 16, %s1842_s11, [#allocation4] }
  0x33   : > { %s917_s6 = sshll.u32 %s1840_s12, 4  ;;  %s1878_s7 = sld [smem:[#allocation7 + $0x2]] }
  0x34   : > { %s78_s10 = scalar_lea.hbm %s2526_s3, %s917_s6  ;;  %s919_s1 = sshll.u32 %s1844_s15, 4 }
  0x35   : > { %s1130_s13 = scalar_lea.hbm %s78_s10, 16  ;;  %s1889_s19 = scalar_lea.hbm %s2526_s3, 8192 }
  0x36   : > { %p1131_p10 = scmp.ne.s32.totalorder %s78_s10, %s1130_s13  ;;  %p1135_p0 = scmp.lt.u32.totalorder %s78_s10, %s2526_s3 }
  0x37   : > { %p1136_p1 = scmp.lt.u32.totalorder %s1889_s19, %s1130_s13  ;;  %p1138_p3 = scmp.lt.u32.totalorder %s1130_s13, %s78_s10 }
  0x38   : > { %p1132_p12 = pnand %p1131_p10, %p1045_p7 }
  0x39   : > { %p1137_p2 = por %p1136_p1, %p1135_p0 }
  0x3a   : > { %p1133_p13 = pneg %p1132_p12 }
  0x3b   : > { %p1139_p4 = por %p1138_p3, %p1137_p2 }
  0x3d   : > { %p1140_p5 = pnand %p1139_p4, %p1133_p13 }
  0x3f   : > { %1143 = shalt.err (!%p1140_p5)  }
  0x40   : > { %s1144_s12 = scalar_lea.vmem %s1846_s14, 16  ;;  %s1900_s15 = scalar_lea.vmem %s1846_s14, 512 }
  0x41   : > { %p1145_p6 = scmp.ne.s32.totalorder %s1846_s14, %s1144_s12  ;;  %p1151_p11 = scmp.lt.s32.totalorder %s1846_s14, %s1846_s14 }
  0x42   : > { %p1152_p10 = scmp.lt.s32.totalorder %s1900_s15, %s1144_s12 }
  0x43   : > { %p1146_p8 = pnand %p1145_p6, %p1045_p7 }
  0x44   : > { %p1153_p12 = por %p1152_p10, %p1151_p11 }
  0x45   : > { %p1147_p9 = pneg %p1146_p8 }
  0x47   : > { %p1154_p0 = pnand %p1153_p12, %p1147_p9 }
  0x49   : > { %1157 = shalt.err (!%p1154_p0)  }
  0x4a   : > { %995 = dma.hbm_to_vmem [thread:$0]  (%p1045_p7), %s78_s10, 16, %s1846_s14, [#allocation4 + $0x1] }
  0x4b   : > { %s93_s24 = scalar_lea.hbm %s2526_s3, %s919_s1 }
  0x4c   : > { %s1158_s26 = scalar_lea.hbm %s93_s24, 16  ;;  %p1163_p3 = scmp.lt.u32.totalorder %s93_s24, %s2526_s3 }
  0x4d   : > { %p1159_p13 = scmp.ne.s32.totalorder %s93_s24, %s1158_s26  ;;  %p1164_p4 = scmp.lt.u32.totalorder %s1889_s19, %s1158_s26 }
  0x4e   : > { %p1166_p6 = scmp.lt.u32.totalorder %s1158_s26, %s93_s24 }
  0x4f   : > { %p1160_p1 = pnand %p1159_p13, %p1045_p7  ;;  %p1165_p5 = por %p1164_p4, %p1163_p3 }
  0x51   : > { %p1161_p2 = pneg %p1160_p1  ;;  %p1167_p8 = por %p1166_p6, %p1165_p5 }
  0x53   : > { %p1168_p9 = pnand %p1167_p8, %p1161_p2 }
  0x55   : > { %1171 = shalt.err (!%p1168_p9)  }
  0x56   : > { %s1172_s29 = scalar_lea.vmem %s1851_s18, 16  ;;  %p1179_p0 = scmp.lt.s32.totalorder %s1851_s18, %s1846_s14 }
  0x57   : > { %p1173_p11 = scmp.ne.s32.totalorder %s1851_s18, %s1172_s29  ;;  %p1180_p13 = scmp.lt.s32.totalorder %s1900_s15, %s1172_s29 }
  0x59   : > { %p1174_p10 = pnand %p1173_p11, %p1045_p7  ;;  %p1181_p1 = por %p1180_p13, %p1179_p0 }
  0x5b   : > { %p1175_p12 = pneg %p1174_p10 }
  0x5d   : > { %p1182_p3 = pnand %p1181_p1, %p1175_p12 }
  0x5f   : > { %1185 = shalt.err (!%p1182_p3)  }
  0x60   : > { %996 = dma.hbm_to_vmem [thread:$0]  (%p1045_p7), %s93_s24, 16, %s1851_s18, [#allocation4 + $0x2] }
  0x61   : > { %s1772_s30 = smov [#allocation3 + $0x2]   ;;  %s1927_s8 = sld [smem:[#allocation7 + $0x3]] }
  0x62   : > { %s119_s6 = sshll.u32 %s1772_s30, 4  ;;  %s921_s9 = sshll.u32 %s1878_s7, 4  ;;  %s120_s6 = int_to_ptr.vmem [resolvable:$true] %s119_s6 }
  0x63   : > { %s109_s13 = scalar_lea.hbm %s2526_s3, %s921_s9 }
  0x64   : > { %s1186_s16 = scalar_lea.hbm %s109_s13, 16  ;;  %p1191_p6 = scmp.lt.u32.totalorder %s109_s13, %s2526_s3 }
  0x65   : > { %p1187_p2 = scmp.ne.s32.totalorder %s109_s13, %s1186_s16  ;;  %p1192_p8 = scmp.lt.u32.totalorder %s1889_s19, %s1186_s16 }
  0x66   : > { %p1194_p11 = scmp.lt.u32.totalorder %s1186_s16, %s109_s13 }
  0x67   : > { %p1188_p4 = pnand %p1187_p2, %p1045_p7  ;;  %p1193_p9 = por %p1192_p8, %p1191_p6 }
  0x69   : > { %p1189_p5 = pneg %p1188_p4  ;;  %p1195_p10 = por %p1194_p11, %p1193_p9 }
  0x6b   : > { %p1196_p12 = pnand %p1195_p10, %p1189_p5 }
  0x6d   : > { %1199 = shalt.err (!%p1196_p12)  }
  0x6e   : > { %s1200_s18 = scalar_lea.vmem %s120_s6, 16  ;;  %p1207_p3 = scmp.lt.s32.totalorder %s120_s6, %s1846_s14 }
  0x6f   : > { %p1201_p0 = scmp.ne.s32.totalorder %s120_s6, %s1200_s18  ;;  %p1208_p2 = scmp.lt.s32.totalorder %s1900_s15, %s1200_s18 }
  0x71   : > { %p1202_p13 = pnand %p1201_p0, %p1045_p7  ;;  %p1209_p4 = por %p1208_p2, %p1207_p3 }
  0x73   : > { %p1203_p1 = pneg %p1202_p13 }
  0x75   : > { %p1210_p6 = pnand %p1209_p4, %p1203_p1 }
  0x77   : > { %1213 = shalt.err (!%p1210_p6)  }
  0x78   : > { %997 = dma.hbm_to_vmem [thread:$0]  (%p1045_p7), %s109_s13, 16, %s120_s6, [#allocation4 + $0x3] }
  0x79   : > { %s1773_s7 = smov [#allocation3 + $0x3]   ;;  %s1945_s12 = sld [smem:[#allocation7 + $0x4]] }
  0x7a   : > { %s135_s21 = sshll.u32 %s1773_s7, 4  ;;  %s923_s22 = sshll.u32 %s1927_s8, 4  ;;  %s136_s21 = int_to_ptr.vmem [resolvable:$true] %s135_s21 }
  0x7b   : > { %s1774_s23 = smov [#allocation3 + $0x4]   ;;  %s125_s28 = scalar_lea.hbm %s2526_s3, %s923_s22 }
  0x7c   : > { %s151_s24 = sshll.u32 %s1774_s23, 4  ;;  %s1214_s29 = scalar_lea.hbm %s125_s28, 16  ;;  %s1951_s24 = int_to_ptr.vmem [resolvable:$true] %s151_s24 }
  0x7d   : > { %p1215_p5 = scmp.ne.s32.totalorder %s125_s28, %s1214_s29  ;;  %p1219_p11 = scmp.lt.u32.totalorder %s125_s28, %s2526_s3 }
  0x7e   : > { %p1220_p10 = scmp.lt.u32.totalorder %s1889_s19, %s1214_s29  ;;  %p1222_p0 = scmp.lt.u32.totalorder %s1214_s29, %s125_s28 }
  0x7f   : > { %p1216_p8 = pnand %p1215_p5, %p1045_p7 }
  0x80   : > { %p1221_p12 = por %p1220_p10, %p1219_p11 }
  0x81   : > { %p1217_p9 = pneg %p1216_p8 }
  0x82   : > { %p1223_p13 = por %p1222_p0, %p1221_p12 }
  0x84   : > { %p1224_p1 = pnand %p1223_p13, %p1217_p9 }
  0x86   : > { %1227 = shalt.err (!%p1224_p1)  }
  0x87   : > { %s1228_s8 = scalar_lea.vmem %s136_s21, 16  ;;  %p1235_p6 = scmp.lt.s32.totalorder %s136_s21, %s1846_s14 }
  0x88   : > { %p1229_p3 = scmp.ne.s32.totalorder %s136_s21, %s1228_s8  ;;  %p1236_p5 = scmp.lt.s32.totalorder %s1900_s15, %s1228_s8 }
  0x8a   : > { %p1230_p2 = pnand %p1229_p3, %p1045_p7  ;;  %p1237_p8 = por %p1236_p5, %p1235_p6 }
  0x8c   : > { %p1231_p4 = pneg %p1230_p2 }
  0x8e   : > { %p1238_p10 = pnand %p1237_p8, %p1231_p4 }
  0x90   : > { %1241 = shalt.err (!%p1238_p10)  }
  0x91   : > { %998 = dma.hbm_to_vmem [thread:$0]  (%p1045_p7), %s125_s28, 16, %s136_s21, [#allocation4 + $0x4] }
  0x92   : > { %s1965_s9 = sld [smem:[#allocation7 + $0x5]]  ;;  %s925_s10 = sshll.u32 %s1945_s12, 4 }
  0x93   : > { %s1775_s1 = smov [#allocation3 + $0x5]   ;;  %s141_s20 = scalar_lea.hbm %s2526_s3, %s925_s10 }
  0x94   : > { %s167_s13 = sshll.u32 %s1775_s1, 4  ;;  %s1242_s18 = scalar_lea.hbm %s141_s20, 16  ;;  %s1971_s13 = int_to_ptr.vmem [resolvable:$true] %s167_s13 }
  0x95   : > { %p1243_p9 = scmp.ne.s32.totalorder %s141_s20, %s1242_s18  ;;  %p1247_p0 = scmp.lt.u32.totalorder %s141_s20, %s2526_s3 }
  0x96   : > { %p1248_p13 = scmp.lt.u32.totalorder %s1889_s19, %s1242_s18  ;;  %p1250_p3 = scmp.lt.u32.totalorder %s1242_s18, %s141_s20 }
  0x97   : > { %p1244_p11 = pnand %p1243_p9, %p1045_p7 }
  0x98   : > { %p1249_p1 = por %p1248_p13, %p1247_p0 }
  0x99   : > { %p1245_p12 = pneg %p1244_p11 }
  0x9a   : > { %p1251_p2 = por %p1250_p3, %p1249_p1 }
  0x9c   : > { %p1252_p4 = pnand %p1251_p2, %p1245_p12 }
  0x9e   : > { %1255 = shalt.err (!%p1252_p4)  }
  0x9f   : > { %s1256_s21 = scalar_lea.vmem %s1951_s24, 16  ;;  %p1263_p10 = scmp.lt.s32.totalorder %s1951_s24, %s1846_s14 }
  0xa0   : > { %p1257_p6 = scmp.ne.s32.totalorder %s1951_s24, %s1256_s21  ;;  %p1264_p9 = scmp.lt.s32.totalorder %s1900_s15, %s1256_s21 }
  0xa2   : > { %p1258_p5 = pnand %p1257_p6, %p1045_p7  ;;  %p1265_p11 = por %p1264_p9, %p1263_p10 }
  0xa4   : > { %p1259_p8 = pneg %p1258_p5 }
  0xa6   : > { %p1266_p0 = pnand %p1265_p11, %p1259_p8 }
  0xa8   : > { %1269 = shalt.err (!%p1266_p0)  }
  0xa9   : > { %999 = dma.hbm_to_vmem [thread:$0]  (%p1045_p7), %s141_s20, 16, %s1951_s24, [#allocation4 + $0x5] }
  0xaa   : > { %s1989_s12 = sld [smem:[#allocation7 + $0x6]]  ;;  %s1776_s23 = smov [#allocation3 + $0x6]  }
  0xab   : > { %s183_s26 = sshll.u32 %s1776_s23, 4  ;;  %s1991_s27 = sld [smem:[#allocation7 + $0x7]]  ;;  %s1994_s26 = int_to_ptr.vmem [resolvable:$true] %s183_s26 }
  0xac   : > { %s927_s28 = sshll.u32 %s1965_s9, 4 }
  0xad   : > { %s157_s6 = scalar_lea.hbm %s2526_s3, %s927_s28 }
  0xae   : > { %s1270_s8 = scalar_lea.hbm %s157_s6, 16  ;;  %p1275_p3 = scmp.lt.u32.totalorder %s157_s6, %s2526_s3 }
  0xaf   : > { %p1271_p12 = scmp.ne.s32.totalorder %s157_s6, %s1270_s8  ;;  %p1276_p2 = scmp.lt.u32.totalorder %s1889_s19, %s1270_s8 }
  0xb0   : > { %p1278_p6 = scmp.lt.u32.totalorder %s1270_s8, %s157_s6 }
  0xb1   : > { %p1272_p13 = pnand %p1271_p12, %p1045_p7  ;;  %p1277_p4 = por %p1276_p2, %p1275_p3 }
  0xb3   : > { %p1273_p1 = pneg %p1272_p13  ;;  %p1279_p5 = por %p1278_p6, %p1277_p4 }
  0xb5   : > { %p1280_p8 = pnand %p1279_p5, %p1273_p1 }
  0xb7   : > { %1283 = shalt.err (!%p1280_p8)  }
  0xb8   : > { %s1284_s9 = scalar_lea.vmem %s1971_s13, 16  ;;  %p1291_p0 = scmp.lt.s32.totalorder %s1971_s13, %s1846_s14 }
  0xb9   : > { %p1285_p10 = scmp.ne.s32.totalorder %s1971_s13, %s1284_s9  ;;  %p1292_p12 = scmp.lt.s32.totalorder %s1900_s15, %s1284_s9 }
  0xbb   : > { %p1286_p9 = pnand %p1285_p10, %p1045_p7  ;;  %p1293_p13 = por %p1292_p12, %p1291_p0 }
  0xbd   : > { %p1287_p11 = pneg %p1286_p9 }
  0xbf   : > { %p1294_p2 = pnand %p1293_p13, %p1287_p11 }
  0xc1   : > { %1297 = shalt.err (!%p1294_p2)  }
  0xc2   : > { %1000 = dma.hbm_to_vmem [thread:$0]  (%p1045_p7), %s157_s6, 16, %s1971_s13, [#allocation4 + $0x6] }
  0xc3   : > { %s1777_s1 = smov [#allocation3 + $0x7]   ;;  %s2015_s17 = sld [smem:[#allocation7 + $0x8]] }
  0xc4   : > { %s199_s16 = sshll.u32 %s1777_s1, 4  ;;  %s929_s20 = sshll.u32 %s1989_s12, 4  ;;  %s2018_s16 = int_to_ptr.vmem [resolvable:$true] %s199_s16 }
  0xc5   : > { %s173_s22 = scalar_lea.hbm %s2526_s3, %s929_s20  ;;  %s931_s21 = sshll.u32 %s1991_s27, 4 }
  0xc6   : > { %s1298_s23 = scalar_lea.hbm %s173_s22, 16  ;;  %p1303_p6 = scmp.lt.u32.totalorder %s173_s22, %s2526_s3 }
  0xc7   : > { %p1299_p1 = scmp.ne.s32.totalorder %s173_s22, %s1298_s23  ;;  %p1304_p5 = scmp.lt.u32.totalorder %s1889_s19, %s1298_s23 }
  0xc8   : > { %p1306_p10 = scmp.lt.u32.totalorder %s1298_s23, %s173_s22 }
  0xc9   : > { %p1300_p3 = pnand %p1299_p1, %p1045_p7  ;;  %p1305_p8 = por %p1304_p5, %p1303_p6 }
  0xcb   : > { %p1301_p4 = pneg %p1300_p3  ;;  %p1307_p9 = por %p1306_p10, %p1305_p8 }
  0xcd   : > { %p1308_p11 = pnand %p1307_p9, %p1301_p4 }
  0xcf   : > { %1311 = shalt.err (!%p1308_p11)  }
  0xd0   : > { %s1312_s13 = scalar_lea.vmem %s1994_s26, 16  ;;  %p1319_p2 = scmp.lt.s32.totalorder %s1994_s26, %s1846_s14 }
  0xd1   : > { %p1313_p0 = scmp.ne.s32.totalorder %s1994_s26, %s1312_s13  ;;  %p1320_p1 = scmp.lt.s32.totalorder %s1900_s15, %s1312_s13 }
  0xd3   : > { %p1314_p12 = pnand %p1313_p0, %p1045_p7  ;;  %p1321_p3 = por %p1320_p1, %p1319_p2 }
  0xd5   : > { %p1315_p13 = pneg %p1314_p12 }
  0xd7   : > { %p1322_p5 = pnand %p1321_p3, %p1315_p13 }
  0xd9   : > { %1325 = shalt.err (!%p1322_p5)  }
  0xda   : > { %1001 = dma.hbm_to_vmem [thread:$0]  (%p1045_p7), %s173_s22, 16, %s1994_s26, [#allocation4 + $0x7] }
  0xdb   : > { %s189_s30 = scalar_lea.hbm %s2526_s3, %s931_s21 }
  0xdc   : > { %s1326_s6 = scalar_lea.hbm %s189_s30, 16  ;;  %p1331_p10 = scmp.lt.u32.totalorder %s189_s30, %s2526_s3 }
  0xdd   : > { %p1327_p4 = scmp.ne.s32.totalorder %s189_s30, %s1326_s6  ;;  %p1332_p9 = scmp.lt.u32.totalorder %s1889_s19, %s1326_s6 }
  0xde   : > { %p1334_p0 = scmp.lt.u32.totalorder %s1326_s6, %s189_s30 }
  0xdf   : > { %p1328_p6 = pnand %p1327_p4, %p1045_p7  ;;  %p1333_p11 = por %p1332_p9, %p1331_p10 }
  0xe1   : > { %p1329_p8 = pneg %p1328_p6  ;;  %p1335_p12 = por %p1334_p0, %p1333_p11 }
  0xe3   : > { %p1336_p13 = pnand %p1335_p12, %p1329_p8 }
  0xe5   : > { %1339 = shalt.err (!%p1336_p13)  }
  0xe6   : > { %s1340_s26 = scalar_lea.vmem %s2018_s16, 16  ;;  %p1347_p5 = scmp.lt.s32.totalorder %s2018_s16, %s1846_s14 }
  0xe7   : > { %p1341_p2 = scmp.ne.s32.totalorder %s2018_s16, %s1340_s26  ;;  %p1348_p4 = scmp.lt.s32.totalorder %s1900_s15, %s1340_s26 }
  0xe9   : > { %p1342_p1 = pnand %p1341_p2, %p1045_p7  ;;  %p1349_p6 = por %p1348_p4, %p1347_p5 }
  0xeb   : > { %p1343_p3 = pneg %p1342_p1 }
  0xed   : > { %p1350_p9 = pnand %p1349_p6, %p1343_p3 }
  0xef   : > { %1353 = shalt.err (!%p1350_p9)  }
  0xf0   : > { %1002 = dma.hbm_to_vmem [thread:$0]  (%p1045_p7), %s189_s30, 16, %s2018_s16, [#allocation4 + $0x8] }
  0xf1   : > { %s933_s24 = sshll.u32 %s2015_s17, 4  ;;  %s1778_s9 = smov [#allocation3 + $0x8]  }
  0xf2   : > { %s215_s1 = sshll.u32 %s1778_s9, 4  ;;  %s205_s7 = scalar_lea.hbm %s2526_s3, %s933_s24  ;;  %s216_s1 = int_to_ptr.vmem [resolvable:$true] %s215_s1 }
  0xf3   : > { %s1354_s22 = scalar_lea.hbm %s205_s7, 16  ;;  %p1359_p0 = scmp.lt.u32.totalorder %s205_s7, %s2526_s3 }
  0xf4   : > { %p1355_p8 = scmp.ne.s32.totalorder %s205_s7, %s1354_s22  ;;  %p1360_p12 = scmp.lt.u32.totalorder %s1889_s19, %s1354_s22 }
  0xf5   : > { %p1362_p2 = scmp.lt.u32.totalorder %s1354_s22, %s205_s7 }
  0xf6   : > { %p1356_p10 = pnand %p1355_p8, %p1045_p7  ;;  %p1361_p13 = por %p1360_p12, %p1359_p0 }
  0xf8   : > { %p1357_p11 = pneg %p1356_p10  ;;  %p1363_p1 = por %p1362_p2, %p1361_p13 }
  0xfa   : > { %p1364_p3 = pnand %p1363_p1, %p1357_p11 }
  0xfc   : > { %1367 = shalt.err (!%p1364_p3)  }
  0xfd   : > { %s1368_s16 = scalar_lea.vmem %s216_s1, 16  ;;  %p1375_p9 = scmp.lt.s32.totalorder %s216_s1, %s1846_s14 }
  0xfe   : > { %p1369_p5 = scmp.ne.s32.totalorder %s216_s1, %s1368_s16  ;;  %p1376_p8 = scmp.lt.s32.totalorder %s1900_s15, %s1368_s16 }
 0x100   : > { %p1370_p4 = pnand %p1369_p5, %p1045_p7  ;;  %p1377_p10 = por %p1376_p8, %p1375_p9 }
 0x102   : > { %p1371_p6 = pneg %p1370_p4 }
 0x104   : > { %p1378_p0 = pnand %p1377_p10, %p1371_p6 }
 0x106   : > { %1381 = shalt.err (!%p1378_p0)  }
 0x107   : > { %1003 = dma.hbm_to_vmem [thread:$0]  (%p1045_p7), %s205_s7, 16, %s216_s1, [#allocation4 + $0x9] }
 0x108   : > { %s934_s17 = sld [smem:[#allocation7 + $0x9]]  ;;  %s1779_s28 = smov [#allocation3 + $0x9]  }
 0x109   : > { %s231_s29 = sshll.u32 %s1779_s28, 4  ;;  %s45_s13 = ssub.s32 0, %s1764_s0  ;;  %s232_s29 = int_to_ptr.vmem [resolvable:$true] %s231_s29 }
 0x10a   : > { %s2078_s12 = smin.u32 %s1764_s0, %s45_s13  ;;  %s235_s27 = sadd.s32 1, %s1764_s0 }
 0x10b   : > { %s47_s30 = sand.u32 1, %s2078_s12   ;;  %p2084_p12 = scmp.lt.s32.totalorder %s235_s27, 8 }
 0x10c   : > { %s48_s6 = ssub.s32 0, %s47_s30 }
 0x10d   : > { %s2530_s10 = scalar_select %p2084_p12, 1, 0 }
 0x10e   : > { %s935_s8 = sshll.u32 %s934_s17, 4 }
 0x10f   : > { %s221_s9 = scalar_lea.hbm %s2526_s3, %s935_s8 }
 0x110   : > { %s1382_s1 = scalar_lea.hbm %s221_s9, 16  ;;  %p1387_p3 = scmp.lt.u32.totalorder %s221_s9, %s2526_s3 }
 0x111   : > { %p1383_p13 = scmp.ne.s32.totalorder %s221_s9, %s1382_s1  ;;  %p1388_p5 = scmp.lt.u32.totalorder %s1889_s19, %s1382_s1 }
 0x112   : > { %p1390_p6 = scmp.lt.u32.totalorder %s1382_s1, %s221_s9 }
 0x113   : > { %p1384_p2 = pnand %p1383_p13, %p1045_p7  ;;  %p1389_p4 = por %p1388_p5, %p1387_p3 }
 0x115   : > { %p1385_p1 = pneg %p1384_p2  ;;  %p1391_p9 = por %p1390_p6, %p1389_p4 }
 0x117   : > { %p1392_p8 = pnand %p1391_p9, %p1385_p1 }
 0x119   : > { %1395 = shalt.err (!%p1392_p8)  }
 0x11a   : > { %s1396_s7 = scalar_lea.vmem %s232_s29, 16  ;;  %p1403_p13 = scmp.lt.s32.totalorder %s232_s29, %s1846_s14 }
 0x11b   : > { %p1397_p10 = scmp.ne.s32.totalorder %s232_s29, %s1396_s7  ;;  %p1404_p2 = scmp.lt.s32.totalorder %s1900_s15, %s1396_s7 }
 0x11d   : > { %p1398_p0 = pnand %p1397_p10, %p1045_p7  ;;  %p1405_p12 = por %p1404_p2, %p1403_p13 }
 0x11f   : > { %p1399_p11 = pneg %p1398_p0 }
 0x121   : > { %p1406_p3 = pnand %p1405_p12, %p1399_p11 }
 0x123   : > { %1409 = shalt.err (!%p1406_p3)  }
 0x124   : > { %1004 = dma.hbm_to_vmem [thread:$0]  (%p1045_p7), %s221_s9, 16, %s232_s29, [#allocation4 + $0xa] }
 0x125   : > { %p2531_p1 = scmp.lt.s32.totalorder %s1764_s0, 0  ;;  %p2532_p5 = scmp.ne.s32.totalorder %s2530_s10, 0 }
 0x126   : > { %s988_s16 = sshll.u32 %s1764_s0, 7 }
 0x127   : > { %s2534_s6 = smov (!%p2531_p1, %s48_s6), %s47_s30  ;;  %s2536_s27 = smov (!%p2532_p5, %s235_s27), 0 }
 0x128   : > { %s1006_s22 = scalar_select %p2532_p5, [#allocation6], [#allocation56] }
 0x129   : > { %p914_p4 = scmp.lt.s32.totalorder %s2534_s6, 0  ;;  %s54_s21 = sadd.s32 2, %s2534_s6 }
 0x12a   : > { %s241_s23 = sld [smem:[%s1006_s22 + %s2536_s27]]  ;;  %s2120_s30 = sadd.s32 128, %s988_s16 }
 0x12b   : > { %s2538_s21 = smov (!%p914_p4, %s54_s21), %s2534_s6 }
 0x12c   : > { %s2115_s17 = ssub.s32 1, %s2538_s21  ;;  %s450_s8 = smul.u32 11, %s2538_s21 }
 0x12d   : > { %s245_s28 = smul.u32 11, %s2115_s17  ;;  %s244_s29 = scalar_lea.vmem [#allocation2], %s2115_s17 }
 0x12e   : > { %s254_s13 = sshll.u32 %s244_s29, 4  ;;  %s940_s12 = sshll.u32 %s2115_s17, 4  ;;  %s255_s13 = int_to_ptr.vmem [resolvable:$true] %s254_s13 }
 0x12f   : > { %s2126_s27 = scalar_lea.sflag [#allocation4], %s245_s28 }
 0x130   : > { %s937_s6 = sshll.u32 %s241_s23, 4 }
 0x131   : > { %s243_s9 = scalar_lea.hbm %s2525_s2, %s937_s6 }
 0x132   : > { %s1410_s1 = scalar_lea.hbm %s243_s9, 16  ;;  %p1415_p6 = scmp.lt.u32.totalorder %s243_s9, %s2525_s2 }
 0x133   : > { %p1411_p7 = scmp.ne.s32.totalorder %s243_s9, %s1410_s1  ;;  %p1416_p9 = scmp.lt.u32.totalorder %s1106_s25, %s1410_s1 }
 0x134   : > { %p1418_p10 = scmp.lt.u32.totalorder %s1410_s1, %s243_s9 }
 0x135   : > { %p1412_p11 = pnand %p1411_p7, %p2532_p5  ;;  %p1417_p8 = por %p1416_p9, %p1415_p6 }
 0x137   : > { %p1413_p12 = pneg %p1412_p11  ;;  %p1419_p0 = por %p1418_p10, %p1417_p8 }
 0x139   : > { %p1420_p13 = pnand %p1419_p0, %p1413_p12 }
 0x13b   : > { %1423 = shalt.err (!%p1420_p13)  }
 0x13c   : > { %s1424_s23 = scalar_lea.vmem %s255_s13, 16  ;;  %p1431_p4 = scmp.lt.s32.totalorder %s255_s13, %s1842_s11 }
 0x13d   : > { %p1425_p2 = scmp.ne.s32.totalorder %s255_s13, %s1424_s23  ;;  %p1432_p7 = scmp.lt.s32.totalorder %s1122_s5, %s1424_s23 }
 0x13f   : > { %p1426_p3 = pnand %p1425_p2, %p2532_p5  ;;  %p1433_p11 = por %p1432_p7, %p1431_p4 }
 0x141   : > { %p1427_p1 = pneg %p1426_p3 }
 0x143   : > { %p1434_p6 = pnand %p1433_p11, %p1427_p1 }
 0x145   : > { %1437 = shalt.err (!%p1434_p6)  }
 0x146   : > { %1008 = dma.hbm_to_vmem [thread:$0]  (%p2532_p5), %s243_s9, 16, %s255_s13, %s2126_s27 }
 0x147   : > { %s1009_s25 = scalar_select %p2532_p5, [#allocation7], [#allocation57] }
 0x148   : > { %s1010_s11 = scalar_select %p2532_p5, %s2120_s30, 0 }
 0x149   : > { %s2152_s5 = scalar_lea.vmem [#allocation3], %s940_s12  ;;  %s277_s28 = sadd.s32 1, %s2120_s30 }
 0x14a   : > { %s273_s16 = sshll.u32 %s2152_s5, 4  ;;  %s259_s29 = sld [smem:[%s1009_s25 + %s1010_s11]]  ;;  %s2162_s16 = int_to_ptr.vmem [resolvable:$true] %s273_s16 }
 0x14b   : > { %s803_s6 = scalar_lea.vmem %s2152_s5, 1 [#allocation3]  ;;  %s2540_s28 = smov (!%p2532_p5, %s277_s28), 0 }
 0x14c   : > { %s1012_s26 = scalar_select %p2532_p5, [#allocation7], [#allocation58] }
 0x14d   : > { %s798_s13 = scalar_lea.sflag %s2126_s27, 1 [#allocation4]  ;;  %s292_s24 = sshll.u32 %s803_s6, 4  ;;  %s2167_s24 = int_to_ptr.vmem [resolvable:$true] %s292_s24 }
 0x14e   : > { %s2164_s17 = sld [smem:[%s1012_s26 + %s2540_s28]]  ;;  %s806_s12 = scalar_lea.sflag %s2126_s27, 2 [#allocation4] }
 0x14f   : > { %s296_s1 = sadd.s32 2, %s2120_s30  ;;  %s811_s22 = scalar_lea.vmem %s2152_s5, 2 [#allocation3] }
 0x150   : > { %s939_s9 = sshll.u32 %s259_s29, 4 }
 0x151   : > { %s261_s7 = scalar_lea.hbm %s2526_s3, %s939_s9 }
 0x152   : > { %s1438_s23 = scalar_lea.hbm %s261_s7, 16  ;;  %p1443_p10 = scmp.lt.u32.totalorder %s261_s7, %s2526_s3 }
 0x153   : > { %p1439_p12 = scmp.ne.s32.totalorder %s261_s7, %s1438_s23  ;;  %p1444_p0 = scmp.lt.u32.totalorder %s1889_s19, %s1438_s23 }
 0x154   : > { %p1446_p2 = scmp.lt.u32.totalorder %s1438_s23, %s261_s7 }
 0x155   : > { %p1440_p9 = pnand %p1439_p12, %p2532_p5  ;;  %p1445_p13 = por %p1444_p0, %p1443_p10 }
 0x157   : > { %p1441_p8 = pneg %p1440_p9  ;;  %p1447_p3 = por %p1446_p2, %p1445_p13 }
 0x159   : > { %p1448_p1 = pnand %p1447_p3, %p1441_p8 }
 0x15b   : > { %1451 = shalt.err (!%p1448_p1)  }
 0x15c   : > { %s1452_s28 = scalar_lea.vmem %s2162_s16, 16  ;;  %p1459_p6 = scmp.lt.s32.totalorder %s2162_s16, %s1846_s14 }
 0x15d   : > { %p1453_p4 = scmp.ne.s32.totalorder %s2162_s16, %s1452_s28  ;;  %p1460_p12 = scmp.lt.s32.totalorder %s1900_s15, %s1452_s28 }
 0x15f   : > { %p1454_p7 = pnand %p1453_p4, %p2532_p5  ;;  %p1461_p9 = por %p1460_p12, %p1459_p6 }
 0x161   : > { %p1455_p11 = pneg %p1454_p7 }
 0x163   : > { %p1462_p0 = pnand %p1461_p9, %p1455_p11 }
 0x165   : > { %1465 = shalt.err (!%p1462_p0)  }
 0x166   : > { %1011 = dma.hbm_to_vmem [thread:$0]  (%p2532_p5), %s261_s7, 16, %s2162_s16, %s798_s13 }
 0x167   : > { %s1015_s29 = scalar_select %p2532_p5, [#allocation7], [#allocation59] }
 0x168   : > { %s941_s6 = sshll.u32 %s2164_s17, 4  ;;  %s2195_s26 = sshll.u32 %s811_s22, 4  ;;  %s2230_s26 = int_to_ptr.vmem [resolvable:$true] %s2195_s26 }
 0x169   : > { %s280_s18 = scalar_lea.hbm %s2526_s3, %s941_s6  ;;  %s315_s23 = sadd.s32 3, %s2120_s30 }
 0x16a   : > { %s1466_s25 = scalar_lea.hbm %s280_s18, 16  ;;  %p1471_p2 = scmp.lt.u32.totalorder %s280_s18, %s2526_s3 }
 0x16b   : > { %p1467_p8 = scmp.ne.s32.totalorder %s280_s18, %s1466_s25  ;;  %p1472_p3 = scmp.lt.u32.totalorder %s1889_s19, %s1466_s25 }
 0x16c   : > { %p1474_p4 = scmp.lt.u32.totalorder %s1466_s25, %s280_s18 }
 0x16d   : > { %p1468_p10 = pnand %p1467_p8, %p2532_p5  ;;  %p1473_p1 = por %p1472_p3, %p1471_p2 }
 0x16f   : > { %p1469_p13 = pneg %p1468_p10  ;;  %p1475_p7 = por %p1474_p4, %p1473_p1 }
 0x171   : > { %p1476_p11 = pnand %p1475_p7, %p1469_p13 }
 0x173   : > { %1479 = shalt.err (!%p1476_p11)  }
 0x174   : > { %s1480_s16 = scalar_lea.vmem %s2167_s24, 16  ;;  %p1487_p0 = scmp.lt.s32.totalorder %s2167_s24, %s1846_s14 }
 0x175   : > { %p1481_p6 = scmp.ne.s32.totalorder %s2167_s24, %s1480_s16  ;;  %p1488_p8 = scmp.lt.s32.totalorder %s1900_s15, %s1480_s16 }
 0x177   : > { %p1482_p12 = pnand %p1481_p6, %p2532_p5  ;;  %p1489_p10 = por %p1488_p8, %p1487_p0 }
 0x179   : > { %p1483_p9 = pneg %p1482_p12 }
 0x17b   : > { %p1490_p2 = pnand %p1489_p10, %p1483_p9 }
 0x17d   : > { %1493 = shalt.err (!%p1490_p2)  }
 0x17e   : > { %1014 = dma.hbm_to_vmem [thread:$0]  (%p2532_p5), %s280_s18, 16, %s2167_s24, %s806_s12 }
 0x17f   : > { %s2542_s1 = smov (!%p2532_p5, %s296_s1), 0  ;;  %s819_s7 = scalar_lea.vmem %s2152_s5, 3 [#allocation3] }
 0x180   : > { %s1018_s13 = scalar_select %p2532_p5, [#allocation7], [#allocation60] }
 0x181   : > { %s297_s17 = sld [smem:[%s1015_s29 + %s2542_s1]]  ;;  %s2544_s23 = smov (!%p2532_p5, %s315_s23), 0 }
 0x182   : > { %s814_s22 = scalar_lea.sflag %s2126_s27, 3 [#allocation4]  ;;  %s330_s6 = sshll.u32 %s819_s7, 4  ;;  %s2235_s6 = int_to_ptr.vmem [resolvable:$true] %s330_s6 }
 0x183   : > { %s2232_s9 = sld [smem:[%s1018_s13 + %s2544_s23]]  ;;  %s822_s20 = scalar_lea.sflag %s2126_s27, 4 [#allocation4] }
 0x184   : > { %s1021_s24 = scalar_select %p2532_p5, [#allocation7], [#allocation61] }
 0x185   : > { %s827_s18 = scalar_lea.vmem %s2152_s5, 4 [#allocation3]  ;;  %s334_s11 = sadd.s32 4, %s2120_s30 }
 0x187   : > { %s943_s12 = sshll.u32 %s297_s17, 4 }
 0x188   : > { %s299_s29 = scalar_lea.hbm %s2526_s3, %s943_s12 }
 0x189   : > { %s1494_s28 = scalar_lea.hbm %s299_s29, 16  ;;  %p1499_p4 = scmp.lt.u32.totalorder %s299_s29, %s2526_s3 }
 0x18a   : > { %p1495_p13 = scmp.ne.s32.totalorder %s299_s29, %s1494_s28  ;;  %p1500_p7 = scmp.lt.u32.totalorder %s1889_s19, %s1494_s28 }
 0x18b   : > { %p1502_p6 = scmp.lt.u32.totalorder %s1494_s28, %s299_s29 }
 0x18c   : > { %p1496_p3 = pnand %p1495_p13, %p2532_p5  ;;  %p1501_p11 = por %p1500_p7, %p1499_p4 }
 0x18e   : > { %p1497_p1 = pneg %p1496_p3  ;;  %p1503_p12 = por %p1502_p6, %p1501_p11 }
 0x190   : > { %p1504_p9 = pnand %p1503_p12, %p1497_p1 }
 0x192   : > { %1507 = shalt.err (!%p1504_p9)  }
 0x193   : > { %s1508_s13 = scalar_lea.vmem %s2230_s26, 16  ;;  %p1515_p2 = scmp.lt.s32.totalorder %s2230_s26, %s1846_s14 }
 0x194   : > { %p1509_p0 = scmp.ne.s32.totalorder %s2230_s26, %s1508_s13  ;;  %p1516_p13 = scmp.lt.s32.totalorder %s1900_s15, %s1508_s13 }
 0x196   : > { %p1510_p8 = pnand %p1509_p0, %p2532_p5  ;;  %p1517_p3 = por %p1516_p13, %p1515_p2 }
 0x198   : > { %p1511_p10 = pneg %p1510_p8 }
 0x19a   : > { %p1518_p4 = pnand %p1517_p3, %p1511_p10 }
 0x19c   : > { %1521 = shalt.err (!%p1518_p4)  }
 0x19d   : > { %1017 = dma.hbm_to_vmem [thread:$0]  (%p2532_p5), %s299_s29, 16, %s2230_s26, %s814_s22 }
 0x19e   : > { %s945_s17 = sshll.u32 %s2232_s9, 4  ;;  %s2263_s7 = sshll.u32 %s827_s18, 4  ;;  %s2301_s7 = int_to_ptr.vmem [resolvable:$true] %s2263_s7 }
 0x19f   : > { %s318_s1 = scalar_lea.hbm %s2526_s3, %s945_s17  ;;  %s353_s28 = sadd.s32 5, %s2120_s30 }
 0x1a0   : > { %s1522_s16 = scalar_lea.hbm %s318_s1, 16  ;;  %p1527_p6 = scmp.lt.u32.totalorder %s318_s1, %s2526_s3 }
 0x1a1   : > { %p1523_p1 = scmp.ne.s32.totalorder %s318_s1, %s1522_s16  ;;  %p1528_p12 = scmp.lt.u32.totalorder %s1889_s19, %s1522_s16 }
 0x1a2   : > { %p1530_p0 = scmp.lt.u32.totalorder %s1522_s16, %s318_s1 }
 0x1a3   : > { %p1524_p7 = pnand %p1523_p1, %p2532_p5  ;;  %p1529_p9 = por %p1528_p12, %p1527_p6 }
 0x1a5   : > { %p1525_p11 = pneg %p1524_p7  ;;  %p1531_p8 = por %p1530_p0, %p1529_p9 }
 0x1a7   : > { %p1532_p10 = pnand %p1531_p8, %p1525_p11 }
 0x1a9   : > { %1535 = shalt.err (!%p1532_p10)  }
 0x1aa   : > { %s1536_s26 = scalar_lea.vmem %s2235_s6, 16  ;;  %p1543_p4 = scmp.lt.s32.totalorder %s2235_s6, %s1846_s14 }
 0x1ab   : > { %p1537_p2 = scmp.ne.s32.totalorder %s2235_s6, %s1536_s26  ;;  %p1544_p1 = scmp.lt.s32.totalorder %s1900_s15, %s1536_s26 }
 0x1ad   : > { %p1538_p13 = pnand %p1537_p2, %p2532_p5  ;;  %p1545_p7 = por %p1544_p1, %p1543_p4 }
 0x1af   : > { %p1539_p3 = pneg %p1538_p13 }
 0x1b1   : > { %p1546_p6 = pnand %p1545_p7, %p1539_p3 }
 0x1b3   : > { %1549 = shalt.err (!%p1546_p6)  }
 0x1b4   : > { %1020 = dma.hbm_to_vmem [thread:$0]  (%p2532_p5), %s318_s1, 16, %s2235_s6, %s822_s20 }
 0x1b5   : > { %s2546_s11 = smov (!%p2532_p5, %s334_s11), 0  ;;  %s835_s18 = scalar_lea.vmem %s2152_s5, 5 [#allocation3] }
 0x1b6   : > { %s1024_s22 = scalar_select %p2532_p5, [#allocation7], [#allocation62] }
 0x1b7   : > { %s335_s9 = sld [smem:[%s1021_s24 + %s2546_s11]]  ;;  %s2548_s28 = smov (!%p2532_p5, %s353_s28), 0 }
 0x1b8   : > { %s830_s29 = scalar_lea.sflag %s2126_s27, 5 [#allocation4]  ;;  %s368_s17 = sshll.u32 %s835_s18, 4  ;;  %s2306_s17 = int_to_ptr.vmem [resolvable:$true] %s368_s17 }
 0x1b9   : > { %s2303_s12 = sld [smem:[%s1024_s22 + %s2548_s28]]  ;;  %s838_s6 = scalar_lea.sflag %s2126_s27, 6 [#allocation4] }
 0x1ba   : > { %s1027_s20 = scalar_select %p2532_p5, [#allocation7], [#allocation63] }
 0x1bb   : > { %s843_s1 = scalar_lea.vmem %s2152_s5, 6 [#allocation3]  ;;  %s372_s23 = sadd.s32 6, %s2120_s30 }
 0x1bd   : > { %s947_s25 = sshll.u32 %s335_s9, 4 }
 0x1be   : > { %s337_s11 = scalar_lea.hbm %s2526_s3, %s947_s25 }
 0x1bf   : > { %s1550_s13 = scalar_lea.hbm %s337_s11, 16  ;;  %p1555_p0 = scmp.lt.u32.totalorder %s337_s11, %s2526_s3 }
 0x1c0   : > { %p1551_p11 = scmp.ne.s32.totalorder %s337_s11, %s1550_s13  ;;  %p1556_p8 = scmp.lt.u32.totalorder %s1889_s19, %s1550_s13 }
 0x1c1   : > { %p1558_p2 = scmp.lt.u32.totalorder %s1550_s13, %s337_s11 }
 0x1c2   : > { %p1552_p12 = pnand %p1551_p11, %p2532_p5  ;;  %p1557_p10 = por %p1556_p8, %p1555_p0 }
 0x1c4   : > { %p1553_p9 = pneg %p1552_p12  ;;  %p1559_p13 = por %p1558_p2, %p1557_p10 }
 0x1c6   : > { %p1560_p3 = pnand %p1559_p13, %p1553_p9 }
 0x1c8   : > { %1563 = shalt.err (!%p1560_p3)  }
 0x1c9   : > { %s1564_s22 = scalar_lea.vmem %s2301_s7, 16  ;;  %p1571_p6 = scmp.lt.s32.totalorder %s2301_s7, %s1846_s14 }
 0x1ca   : > { %p1565_p4 = scmp.ne.s32.totalorder %s2301_s7, %s1564_s22  ;;  %p1572_p11 = scmp.lt.s32.totalorder %s1900_s15, %s1564_s22 }
 0x1cc   : > { %p1566_p1 = pnand %p1565_p4, %p2532_p5  ;;  %p1573_p12 = por %p1572_p11, %p1571_p6 }
 0x1ce   : > { %p1567_p7 = pneg %p1566_p1 }
 0x1d0   : > { %p1574_p0 = pnand %p1573_p12, %p1567_p7 }
 0x1d2   : > { %1577 = shalt.err (!%p1574_p0)  }
 0x1d3   : > { %1023 = dma.hbm_to_vmem [thread:$0]  (%p2532_p5), %s337_s11, 16, %s2301_s7, %s830_s29 }
 0x1d4   : > { %s949_s9 = sshll.u32 %s2303_s12, 4  ;;  %s2334_s18 = sshll.u32 %s843_s1, 4  ;;  %s388_s18 = int_to_ptr.vmem [resolvable:$true] %s2334_s18 }
 0x1d5   : > { %s356_s24 = scalar_lea.hbm %s2526_s3, %s949_s9  ;;  %s391_s13 = sadd.s32 7, %s2120_s30 }
 0x1d6   : > { %s1578_s26 = scalar_lea.hbm %s356_s24, 16  ;;  %p1583_p2 = scmp.lt.u32.totalorder %s356_s24, %s2526_s3 }
 0x1d7   : > { %p1579_p9 = scmp.ne.s32.totalorder %s356_s24, %s1578_s26  ;;  %p1584_p13 = scmp.lt.u32.totalorder %s1889_s19, %s1578_s26 }
 0x1d8   : > { %p1586_p4 = scmp.lt.u32.totalorder %s1578_s26, %s356_s24 }
 0x1d9   : > { %p1580_p8 = pnand %p1579_p9, %p2532_p5  ;;  %p1585_p3 = por %p1584_p13, %p1583_p2 }
 0x1db   : > { %p1581_p10 = pneg %p1580_p8  ;;  %p1587_p1 = por %p1586_p4, %p1585_p3 }
 0x1dd   : > { %p1588_p7 = pnand %p1587_p1, %p1581_p10 }
 0x1df   : > { %1591 = shalt.err (!%p1588_p7)  }
 0x1e0   : > { %s1592_s7 = scalar_lea.vmem %s2306_s17, 16  ;;  %p1599_p0 = scmp.lt.s32.totalorder %s2306_s17, %s1846_s14 }
 0x1e1   : > { %p1593_p6 = scmp.ne.s32.totalorder %s2306_s17, %s1592_s7  ;;  %p1600_p9 = scmp.lt.s32.totalorder %s1900_s15, %s1592_s7 }
 0x1e3   : > { %p1594_p11 = pnand %p1593_p6, %p2532_p5  ;;  %p1601_p8 = por %p1600_p9, %p1599_p0 }
 0x1e5   : > { %p1595_p12 = pneg %p1594_p11 }
 0x1e7   : > { %p1602_p2 = pnand %p1601_p8, %p1595_p12 }
 0x1e9   : > { %1605 = shalt.err (!%p1602_p2)  }
 0x1ea   : > { %1026 = dma.hbm_to_vmem [thread:$0]  (%p2532_p5), %s356_s24, 16, %s2306_s17, %s838_s6 }
 0x1eb   : > { %s2550_s23 = smov (!%p2532_p5, %s372_s23), 0  ;;  %s851_s1 = scalar_lea.vmem %s2152_s5, 7 [#allocation3] }
 0x1ec   : > { %s1030_s29 = scalar_select %p2532_p5, [#allocation7], [#allocation64] }
 0x1ed   : > { %s373_s12 = sld [smem:[%s1027_s20 + %s2550_s23]]  ;;  %s2552_s13 = smov (!%p2532_p5, %s391_s13), 0 }
 0x1ee   : > { %s846_s11 = scalar_lea.sflag %s2126_s27, 7 [#allocation4]  ;;  %s2371_s9 = sld [smem:[%s1030_s29 + %s2552_s13]] }
 0x1ef   : > { %s406_s25 = sshll.u32 %s851_s1, 4  ;;  %s854_s16 = scalar_lea.sflag %s2126_s27, 8 [#allocation4]  ;;  %s2377_s25 = int_to_ptr.vmem [resolvable:$true] %s406_s25 }
 0x1f0   : > { %s1033_s17 = scalar_select %p2532_p5, [#allocation7], [#allocation65] }
 0x1f1   : > { %s410_s20 = sadd.s32 8, %s2120_s30 }
 0x1f3   : > { %s951_s6 = sshll.u32 %s373_s12, 4 }
 0x1f4   : > { %s375_s28 = scalar_lea.hbm %s2526_s3, %s951_s6 }
 0x1f5   : > { %s1606_s23 = scalar_lea.hbm %s375_s28, 16  ;;  %p1611_p4 = scmp.lt.u32.totalorder %s375_s28, %s2526_s3 }
 0x1f6   : > { %p1607_p10 = scmp.ne.s32.totalorder %s375_s28, %s1606_s23  ;;  %p1612_p1 = scmp.lt.u32.totalorder %s1889_s19, %s1606_s23 }
 0x1f7   : > { %p1614_p6 = scmp.lt.u32.totalorder %s1606_s23, %s375_s28 }
 0x1f8   : > { %p1608_p13 = pnand %p1607_p10, %p2532_p5  ;;  %p1613_p7 = por %p1612_p1, %p1611_p4 }
 0x1fa   : > { %p1609_p3 = pneg %p1608_p13  ;;  %p1615_p11 = por %p1614_p6, %p1613_p7 }
 0x1fc   : > { %p1616_p12 = pnand %p1615_p11, %p1609_p3 }
 0x1fe   : > { %1619 = shalt.err (!%p1616_p12)  }
 0x1ff   : > { %s1620_s7 = scalar_lea.vmem %s388_s18, 16  ;;  %p1627_p2 = scmp.lt.s32.totalorder %s388_s18, %s1846_s14 }
 0x200   : > { %p1621_p0 = scmp.ne.s32.totalorder %s388_s18, %s1620_s7  ;;  %p1628_p10 = scmp.lt.s32.totalorder %s1900_s15, %s1620_s7 }
 0x202   : > { %p1622_p9 = pnand %p1621_p0, %p2532_p5  ;;  %p1629_p13 = por %p1628_p10, %p1627_p2 }
 0x204   : > { %p1623_p8 = pneg %p1622_p9 }
 0x206   : > { %p1630_p1 = pnand %p1629_p13, %p1623_p8 }
 0x208   : > { %1633 = shalt.err (!%p1630_p1)  }
 0x209   : > { %1029 = dma.hbm_to_vmem [thread:$0]  (%p2532_p5), %s375_s28, 16, %s388_s18, %s846_s11 }
 0x20a   : > { %s953_s29 = sshll.u32 %s2371_s9, 4  ;;  %s859_s12 = scalar_lea.vmem %s2152_s5, 8 [#allocation3] }
 0x20b   : > { %s394_s24 = scalar_lea.hbm %s2526_s3, %s953_s29  ;;  %s429_s26 = sadd.s32 9, %s2120_s30 }
 0x20c   : > { %s1634_s23 = scalar_lea.hbm %s394_s24, 16  ;;  %p1639_p6 = scmp.lt.u32.totalorder %s394_s24, %s2526_s3 }
 0x20d   : > { %p1635_p3 = scmp.ne.s32.totalorder %s394_s24, %s1634_s23  ;;  %p1640_p11 = scmp.lt.u32.totalorder %s1889_s19, %s1634_s23 }
 0x20e   : > { %p1642_p0 = scmp.lt.u32.totalorder %s1634_s23, %s394_s24 }
 0x20f   : > { %p1636_p4 = pnand %p1635_p3, %p2532_p5  ;;  %p1641_p12 = por %p1640_p11, %p1639_p6 }
 0x211   : > { %p1637_p7 = pneg %p1636_p4  ;;  %p1643_p9 = por %p1642_p0, %p1641_p12 }
 0x213   : > { %p1644_p8 = pnand %p1643_p9, %p1637_p7 }
 0x215   : > { %1647 = shalt.err (!%p1644_p8)  }
 0x216   : > { %s1648_s18 = scalar_lea.vmem %s2377_s25, 16  ;;  %p1655_p1 = scmp.lt.s32.totalorder %s2377_s25, %s1846_s14 }
 0x217   : > { %p1649_p2 = scmp.ne.s32.totalorder %s2377_s25, %s1648_s18  ;;  %p1656_p3 = scmp.lt.s32.totalorder %s1900_s15, %s1648_s18 }
 0x219   : > { %p1650_p10 = pnand %p1649_p2, %p2532_p5  ;;  %p1657_p4 = por %p1656_p3, %p1655_p1 }
 0x21b   : > { %p1651_p13 = pneg %p1650_p10 }
 0x21d   : > { %p1658_p6 = pnand %p1657_p4, %p1651_p13 }
 0x21f   : > { %1661 = shalt.err (!%p1658_p6)  }
 0x220   : > { %1032 = dma.hbm_to_vmem [thread:$0]  (%p2532_p5), %s394_s24, 16, %s2377_s25, %s854_s16 }
 0x221   : > { %s2554_s20 = smov (!%p2532_p5, %s410_s20), 0  ;;  %s867_s28 = scalar_lea.vmem %s2152_s5, 9 [#allocation3] }
 0x222   : > { %s1036_s11 = scalar_select %p2532_p5, [#allocation7], [#allocation66] }
 0x223   : > { %s411_s9 = sld [smem:[%s1033_s17 + %s2554_s20]]  ;;  %s2556_s26 = smov (!%p2532_p5, %s429_s26), 0 }
 0x224   : > { %s425_s7 = sshll.u32 %s859_s12, 4  ;;  %s2433_s29 = sld [smem:[%s1036_s11 + %s2556_s26]]  ;;  %s426_s7 = int_to_ptr.vmem [resolvable:$true] %s425_s7 }
 0x225   : > { %s444_s1 = sshll.u32 %s867_s28, 4  ;;  %s862_s6 = scalar_lea.sflag %s2126_s27, 9 [#allocation4]  ;;  %s2440_s1 = int_to_ptr.vmem [resolvable:$true] %s444_s1 }
 0x226   : > { %s870_s30 = scalar_lea.sflag %s2126_s27, 10 [#allocation4] }
 0x229   : > { %s955_s25 = sshll.u32 %s411_s9, 4 }
 0x22a   : > { %s413_s23 = scalar_lea.hbm %s2526_s3, %s955_s25 }
 0x22b   : > { %s1662_s13 = scalar_lea.hbm %s413_s23, 16  ;;  %p1667_p0 = scmp.lt.u32.totalorder %s413_s23, %s2526_s3 }
 0x22c   : > { %p1663_p7 = scmp.ne.s32.totalorder %s413_s23, %s1662_s13  ;;  %p1668_p9 = scmp.lt.u32.totalorder %s1889_s19, %s1662_s13 }
 0x22d   : > { %p1670_p2 = scmp.lt.u32.totalorder %s1662_s13, %s413_s23 }
 0x22e   : > { %p1664_p11 = pnand %p1663_p7, %p2532_p5  ;;  %p1669_p8 = por %p1668_p9, %p1667_p0 }
 0x230   : > { %p1665_p12 = pneg %p1664_p11  ;;  %p1671_p10 = por %p1670_p2, %p1669_p8 }
 0x232   : > { %p1672_p13 = pnand %p1671_p10, %p1665_p12 }
 0x234   : > { %1675 = shalt.err (!%p1672_p13)  }
 0x235   : > { %s1676_s20 = scalar_lea.vmem %s426_s7, 16  ;;  %p1683_p6 = scmp.lt.s32.totalorder %s426_s7, %s1846_s14 }
 0x236   : > { %p1677_p1 = scmp.ne.s32.totalorder %s426_s7, %s1676_s20  ;;  %p1684_p7 = scmp.lt.s32.totalorder %s1900_s15, %s1676_s20 }
 0x238   : > { %p1678_p3 = pnand %p1677_p1, %p2532_p5  ;;  %p1685_p11 = por %p1684_p7, %p1683_p6 }
 0x23a   : > { %p1679_p4 = pneg %p1678_p3 }
 0x23c   : > { %p1686_p0 = pnand %p1685_p11, %p1679_p4 }
 0x23e   : > { %1689 = shalt.err (!%p1686_p0)  }
 0x23f   : > { %1035 = dma.hbm_to_vmem [thread:$0]  (%p2532_p5), %s413_s23, 16, %s426_s7, %s862_s6 }
 0x240   : > { %s957_s12 = sshll.u32 %s2433_s29, 4 }
 0x241   : > { %s432_s18 = scalar_lea.hbm %s2526_s3, %s957_s12 }
 0x242   : > { %s1690_s11 = scalar_lea.hbm %s432_s18, 16  ;;  %p1695_p2 = scmp.lt.u32.totalorder %s432_s18, %s2526_s3 }
 0x243   : > { %p1691_p12 = scmp.ne.s32.totalorder %s432_s18, %s1690_s11  ;;  %p1696_p10 = scmp.lt.u32.totalorder %s1889_s19, %s1690_s11 }
 0x244   : > { %p1698_p1 = scmp.lt.u32.totalorder %s1690_s11, %s432_s18 }
 0x245   : > { %p1692_p9 = pnand %p1691_p12, %p2532_p5  ;;  %p1697_p13 = por %p1696_p10, %p1695_p2 }
 0x247   : > { %p1693_p8 = pneg %p1692_p9  ;;  %p1699_p3 = por %p1698_p1, %p1697_p13 }
 0x249   : > { %p1700_p4 = pnand %p1699_p3, %p1693_p8 }
 0x24b   : > { %1703 = shalt.err (!%p1700_p4)  }
 0x24c   : > { %s1704_s7 = scalar_lea.vmem %s2440_s1, 16  ;;  %p1711_p0 = scmp.lt.s32.totalorder %s2440_s1, %s1846_s14 }
 0x24d   : > { %p1705_p6 = scmp.ne.s32.totalorder %s2440_s1, %s1704_s7  ;;  %p1712_p12 = scmp.lt.s32.totalorder %s1900_s15, %s1704_s7 }
 0x24f   : > { %p1706_p7 = pnand %p1705_p6, %p2532_p5  ;;  %p1713_p9 = por %p1712_p12, %p1711_p0 }
 0x251   : > { %p1707_p11 = pneg %p1706_p7 }
 0x253   : > { %p1714_p2 = pnand %p1713_p9, %p1707_p11 }
 0x255   : > { %1717 = shalt.err (!%p1714_p2)  }
 0x256   : > { %1038 = dma.hbm_to_vmem [thread:$0]  (%p2532_p5), %s432_s18, 16, %s2440_s1, %s870_s30 }
 0x257   : > { %s449_s19 = scalar_lea.vmem [#allocation2], %s2538_s21  ;;  %s2479_s29 = scalar_lea.sflag [#allocation4], %s450_s8 }
 0x258   : > { %1736 = dma.done.wait %s2479_s29, 16 }
 0x259   : > { %1737 = vsyncadd %s2479_s29, 4294967280  ;;  %s876_s14 = scalar_lea.sflag %s2479_s29, 1 [#allocation4] }
 0x25a   : > { %1738 = dma.done.wait %s876_s14, 16 }
 0x25b   : > { %1739 = vsyncadd %s876_s14, 4294967280  ;;  %s879_s15 = scalar_lea.sflag %s2479_s29, 2 [#allocation4] }
 0x25c   : > { %1740 = dma.done.wait %s879_s15, 16 }
 0x25d   : > { %1741 = vsyncadd %s879_s15, 4294967280  ;;  %s882_s10 = scalar_lea.sflag %s2479_s29, 3 [#allocation4] }
 0x25e   : > { %1742 = dma.done.wait %s882_s10, 16 }
 0x25f   : > { %1743 = vsyncadd %s882_s10, 4294967280  ;;  %s885_s27 = scalar_lea.sflag %s2479_s29, 4 [#allocation4] }
 0x260   : > { %1744 = dma.done.wait %s885_s27, 16 }
 0x261   : > { %1745 = vsyncadd %s885_s27, 4294967280  ;;  %s888_s8 = scalar_lea.sflag %s2479_s29, 5 [#allocation4] }
 0x262   : > { %1746 = dma.done.wait %s888_s8, 16 }
 0x263   : > { %1747 = vsyncadd %s888_s8, 4294967280  ;;  %s891_s1 = scalar_lea.sflag %s2479_s29, 6 [#allocation4] }
 0x264   : > { %1748 = dma.done.wait %s891_s1, 16 }
 0x265   : > { %1749 = vsyncadd %s891_s1, 4294967280  ;;  %s894_s6 = scalar_lea.sflag %s2479_s29, 7 [#allocation4] }
 0x266   : > { %1750 = dma.done.wait %s894_s6, 16 }
 0x267   : > { %1751 = vsyncadd %s894_s6, 4294967280  ;;  %s897_s25 = scalar_lea.sflag %s2479_s29, 8 [#allocation4] }
 0x268   : > { %1752 = dma.done.wait %s897_s25, 16 }
 0x269   : > { %1753 = vsyncadd %s897_s25, 4294967280  ;;  %s900_s30 = scalar_lea.sflag %s2479_s29, 9 [#allocation4] }
 0x26a   : > { %1754 = dma.done.wait %s900_s30, 16 }
 0x26b   : > { %1755 = vsyncadd %s900_s30, 4294967280  ;;  %s903_s16 = scalar_lea.sflag %s2479_s29, 10 [#allocation4] }
 0x26c   : > { %1756 = dma.done.wait %s903_s16, 16 }
 0x26d   : > { %1757 = vsyncadd %s903_s16, 4294967280  ;;  %s959_s24 = sshll.u32 %s2538_s21, 4  ;;  %v960_v0 = vld [vmem:[%s449_s19] ss:$0 sm:$0xff]  ;;  %vm530_vm0 = vcmask 1041408   ;;  %v534_v6 = vlaneseq  ;;  %vm565_vm2 = vcmask 7168  }
 0x26e   : > { %s517_s23 = scalar_lea.vmem [#allocation3], %s959_s24  ;;  %v1780_v28 = vmov 0.020833334   ;;  %vm567_vm3 = vcmask 1024   ;;  %s579_s21 = sld [smem:[#allocation8]] }
 0x26f   : > { %v518_v1 = vld [vmem:[%s517_s23] sm:$0xff]  ;;  %v519_v2 = vld [vmem:[%s517_s23 + $0x8] sm:$0x3]  ;;  %v535_v7 = vshrl.u32 %v534_v6, 7  ;;  %p1047_p5 = scmp.eq.s32.totalorder %s1764_s0, 7  ;;  %s1718_s26 = scalar_lea.hbm %s2527_s4, 16 }
 0x270   : > { %v526_v3 = vmul.f32 %v960_v0, %v518_v1  ;;  %v527_v4 = vmul.f32 %v960_v0, %v519_v2  ;;  %p1719_p8 = scmp.ne.s32.totalorder %s2527_s4, %s1718_s26  ;;  %p1724_p1 = scmp.lt.u32.totalorder %s1718_s26, %s2527_s4 }
 0x271   : > { %vm537_vm1 = vcmp.lt.s32.totalorder %v535_v7, 4 }
 0x272   : > { %528 = vadd.xlane.f32.xlu0 %v526_v3  ;;  %v531_v5 = vsel %vm530_vm0, %v527_v4, 0.0  ;;  %v543_v29 = vsel %vm537_vm1, 0.03125, %v1780_v28  ;;  %p1720_p10 = pnand %p1719_p8, %p1047_p5 }
 0x274   : > { %p1721_p13 = pneg %p1720_p10 }
 0x276   : > { %532 = vadd.xlane.f32.xlu0 %v531_v5  ;;  %p1726_p3 = pnand %p1724_p1, %p1721_p13 }
 0x2ff   : > { %v529_v8 = vpop.xlane.xlu0 %528 }
 0x300   : > { %v539_v9 = vsub.f32 0.0, %v529_v8 }
 0x302   : > { %v541_v10 = vsel %vm537_vm1, %v529_v8, %v539_v9 }
 0x303   : > { %v547_v11 = vand.u32 2147483647, %v541_v10  ;;  %v533_v12 = vpop.xlane.xlu0 %532  ;;  %v545_v24 = vmin.f32 %v541_v10, 0.0 }
 0x304   : > { %v540_v13 = vsub.f32 0.0, %v533_v12 }
 0x305   : > { %v549_v14 = vsub.f32 0.0, %v547_v11 }
 0x306   : > { %v548_v15 = vand.u32 2147483647, %v540_v13  ;;  %v546_v30 = vmin.f32 %v540_v13, 0.0 }
 0x307   : > { %v551_v16 = vmul.f32 1.442695, %v549_v14 }
 0x308   : > { %v550_v17 = vsub.f32 0.0, %v548_v15 }
 0x309   : > { %1074 = vpow2.f32 %v551_v16 }
 0x30a   : > { %v553_v18 = vmul.f32 1.442695, %v550_v17 }
 0x30c   : > { %1076 = vpow2.f32 %v553_v18 }
 0x313   : > { %v1075_v19 = vpop.eup %1074 }
 0x314   : > { %v555_v20 = vadd.f32 1.0, %v1075_v19 }
 0x316   : > { %v1077_v21 = vpop.eup %1076  ;;  %1078 = vlog2.f32 %v555_v20 }
 0x317   : > { %v556_v22 = vadd.f32 1.0, %v1077_v21 }
 0x319   : > { %1080 = vlog2.f32 %v556_v22 }
 0x320   : > { %v1079_v23 = vpop.eup %1078 }
 0x321   : > { %v558_v25 = vmul.f32 0.6931472, %v1079_v23 }
 0x323   : > { %v1081_v26 = vpop.eup %1080  ;;  %v561_v27 = vsub.f32 %v545_v24, %v558_v25 }
 0x324   : > { %v560_v31 = vmul.f32 0.6931472, %v1081_v26 }
 0x325   : > { %v563_v33 = vmul.f32 %v561_v27, %v543_v29 }
 0x326   : > { %v562_v32 = vsub.f32 %v546_v30, %v560_v31 }
 0x327   : > { %v566_v35 = vsel %vm565_vm2, %v563_v33, 0.0 }
 0x328   : > { %v564_v34 = vmul.f32 0.020833334, %v562_v32 }
 0x32a   : > { %v568_v36 = vsel %vm567_vm3, %v564_v34, 0.0 }
 0x32b   : > { %v569_v37 = vadd.f32 %v568_v36, %v566_v35 }
 0x32d   : > { %570 = vadd.xlane.f32.xlu1 %v569_v37 }
 0x3ba   : > { %v571_v38 = vpop.xlane.xlu1 %570 }
 0x3bb   : > { %v572_v39 = vrot.slane %v571_v38, 4 }
 0x3bd   : > { %v573_v40 = vadd.f32 %v572_v39, %v571_v38 }
 0x3bf   : > { %v574_v41 = vrot.slane %v573_v40, 2 }
 0x3c1   : > { %v575_v42 = vadd.f32 %v574_v41, %v573_v40 }
 0x3c3   : > { %v576_v43 = vrot.slane %v575_v42, 1 }
 0x3c5   : > { %v577_v44 = vadd.f32 %v576_v43, %v575_v42 }
 0x3c7   : > { %990 = vpush %v577_v44 }
 0x3f8   : > { %s991_s13 = spop %990 }
 0x3f9   : > { %s580_s5 = sadd.f32 %s991_s13, %s579_s21 }
 0x3fb   : > { %582 = sst [smem:[#allocation8]] %s580_s5 }
 0x3fc   : > { %s588_s17 = ssub.f32 0.0, %s580_s5 }
 0x3fe   : > { %1040 = sst [smem:[#allocation8]] (%p1047_p5), %s588_s17 }
 0x3ff   : > { %1729 = shalt.err (!%p1726_p3)
}
 0x400   : > { %s1781_s28 = smov [#allocation8]  }
 0x401   : > { %1042 = dma.smem_to_hbm (%p1047_p5), %s1781_s28, 16, %s2527_s4, [#allocation9]  }
 0x402   : > { %1759 = dma.done.wait (%p1047_p5), [#allocation9], 16  }
 0x403   : > { %1761 = vsyncadd (%p1047_p5), [#allocation9], 4294967280 }
 0x404   : > { %603 = sfence }
 0x405 PF: > { %s21_s0 = sadd.s32 1, %s1764_s0  }
 0x406   : > { %p18_p4 = scmp.ge.s32.totalorder %s21_s0, 9  }
 0x408   :  { %20 = sbr.rel (!%p18_p4) target bundleno = 20 (0x14), region = 235 }
 0x40f   :  { %609 = vsyncpa [#allocation9], 1 }
 0x410   :  { %611 = vsyncpa [#allocation9 + $0x1], 1 }
 0x411   :  { %612 = vsyncmov [#allocation4] }
 0x414   :  { %s613_s29 = vpop.sfrf %612 }
 0x415   :  { %p966_p6 = scmp.ne.s32.totalorder %s613_s29, 0 }
 0x417   :  { %617 = shalt.err (%p966_p6)  }
 0x418   :  { %619 = vsyncmov [#allocation4 + $0x1] }
 0x41b   :  { %s620_s14 = vpop.sfrf %619 }
 0x41c   :  { %p967_p7 = scmp.ne.s32.totalorder %s620_s14, 0 }
 0x41e   :  { %624 = shalt.err (%p967_p7)  }
 0x41f   :  { %626 = vsyncmov [#allocation4 + $0x2] }
 0x422   :  { %s627_s15 = vpop.sfrf %626 }
 0x423   :  { %p968_p11 = scmp.ne.s32.totalorder %s627_s15, 0 }
 0x425   :  { %631 = shalt.err (%p968_p11)  }
 0x426   :  { %633 = vsyncmov [#allocation4 + $0x3] }
 0x429   :  { %s634_s10 = vpop.sfrf %633 }
 0x42a   :  { %p969_p0 = scmp.ne.s32.totalorder %s634_s10, 0 }
 0x42c   :  { %638 = shalt.err (%p969_p0)  }
 0x42d   :  { %640 = vsyncmov [#allocation4 + $0x4] }
 0x430   :  { %s641_s0 = vpop.sfrf %640 }
 0x431   :  { %p970_p12 = scmp.ne.s32.totalorder %s641_s0, 0 }
 0x433   :  { %645 = shalt.err (%p970_p12)  }
 0x434   :  { %647 = vsyncmov [#allocation4 + $0x5] }
 0x437   :  { %s648_s2 = vpop.sfrf %647 }
 0x438   :  { %p971_p9 = scmp.ne.s32.totalorder %s648_s2, 0 }
 0x43a   :  { %652 = shalt.err (%p971_p9)  }
 0x43b   :  { %654 = vsyncmov [#allocation4 + $0x6] }
 0x43e   :  { %s655_s3 = vpop.sfrf %654 }
 0x43f   :  { %p972_p2 = scmp.ne.s32.totalorder %s655_s3, 0 }
 0x441   :  { %659 = shalt.err (%p972_p2)  }
 0x442   :  { %661 = vsyncmov [#allocation4 + $0x7] }
 0x445   :  { %s662_s4 = vpop.sfrf %661 }
 0x446   :  { %p973_p5 = scmp.ne.s32.totalorder %s662_s4, 0 }
 0x448   :  { %666 = shalt.err (%p973_p5)  }
 0x449   :  { %668 = vsyncmov [#allocation4 + $0x8] }
 0x44c   :  { %s669_s27 = vpop.sfrf %668 }
 0x44d   :  { %p974_p8 = scmp.ne.s32.totalorder %s669_s27, 0 }
 0x44f   :  { %673 = shalt.err (%p974_p8)  }
 0x450   :  { %675 = vsyncmov [#allocation4 + $0x9] }
 0x453   :  { %s676_s8 = vpop.sfrf %675 }
 0x454   :  { %p975_p10 = scmp.ne.s32.totalorder %s676_s8, 0 }
 0x456   :  { %680 = shalt.err (%p975_p10)  }
 0x457   :  { %682 = vsyncmov [#allocation4 + $0xa] }
 0x45a   :  { %s683_s1 = vpop.sfrf %682 }
 0x45b   :  { %p976_p13 = scmp.ne.s32.totalorder %s683_s1, 0 }
 0x45d   :  { %687 = shalt.err (%p976_p13)  }
 0x45e   :  { %689 = vsyncmov [#allocation4 + $0xb] }
 0x461   :  { %s690_s6 = vpop.sfrf %689 }
 0x462   :  { %p977_p1 = scmp.ne.s32.totalorder %s690_s6, 0 }
 0x464   :  { %694 = shalt.err (%p977_p1)  }
 0x465   :  { %696 = vsyncmov [#allocation4 + $0xc] }
 0x468   :  { %s697_s25 = vpop.sfrf %696 }
 0x469   :  { %p978_p3 = scmp.ne.s32.totalorder %s697_s25, 0 }
 0x46b   :  { %701 = shalt.err (%p978_p3)  }
 0x46c   :  { %703 = vsyncmov [#allocation4 + $0xd] }
 0x46f   :  { %s704_s30 = vpop.sfrf %703 }
 0x470   :  { %p979_p4 = scmp.ne.s32.totalorder %s704_s30, 0 }
 0x472   :  { %708 = shalt.err (%p979_p4)  }
 0x473   :  { %710 = vsyncmov [#allocation4 + $0xe] }
 0x476   :  { %s711_s16 = vpop.sfrf %710 }
 0x477   :  { %p980_p6 = scmp.ne.s32.totalorder %s711_s16, 0 }
 0x479   :  { %715 = shalt.err (%p980_p6)  }
 0x47a   :  { %717 = vsyncmov [#allocation4 + $0xf] }
 0x47d   :  { %s718_s24 = vpop.sfrf %717 }
 0x47e   :  { %p981_p7 = scmp.ne.s32.totalorder %s718_s24, 0 }
 0x480   :  { %722 = shalt.err (%p981_p7)  }
 0x481   :  { %724 = vsyncmov [#allocation4 + $0x10] }
 0x484   :  { %s725_s23 = vpop.sfrf %724 }
 0x485   :  { %p982_p11 = scmp.ne.s32.totalorder %s725_s23, 0 }
 0x487   :  { %729 = shalt.err (%p982_p11)  }
 0x488   :  { %731 = vsyncmov [#allocation4 + $0x11] }
 0x48b   :  { %s732_s21 = vpop.sfrf %731 }
 0x48c   :  { %p983_p0 = scmp.ne.s32.totalorder %s732_s21, 0 }
 0x48e   :  { %736 = shalt.err (%p983_p0)  }
 0x48f   :  { %738 = vsyncmov [#allocation4 + $0x12] }
 0x492   :  { %s739_s13 = vpop.sfrf %738 }
 0x493   :  { %p984_p12 = scmp.ne.s32.totalorder %s739_s13, 0 }
 0x495   :  { %743 = shalt.err (%p984_p12)  }
 0x496   :  { %745 = vsyncmov [#allocation4 + $0x13] }
 0x499   :  { %s746_s5 = vpop.sfrf %745 }
 0x49a   :  { %p985_p9 = scmp.ne.s32.totalorder %s746_s5, 0 }
 0x49c   :  { %750 = shalt.err (%p985_p9)  }
 0x49d   :  { %752 = vsyncmov [#allocation4 + $0x14] }
 0x4a0   :  { %s753_s17 = vpop.sfrf %752 }
 0x4a1   :  { %p986_p2 = scmp.ne.s32.totalorder %s753_s17, 0 }
 0x4a3   :  { %757 = shalt.err (%p986_p2)  }
 0x4a4   :  { %759 = vsyncmov [#allocation4 + $0x15] }
 0x4a7   :  { %s760_s20 = vpop.sfrf %759 }
 0x4a8   :  { %p987_p5 = scmp.ne.s32.totalorder %s760_s20, 0 }
 0x4aa   :  { %764 = shalt.err (%p987_p5)  }

</bundles_post_ra>
